<compile_context>
chip_gen: v6e
topology: v6e:2x2x1
jax: 0.10.0
libtpu: 0.0.40
codegen_flags: <defaults>
</compile_context>

<pallas_src>
import functools

import jax
import jax.numpy as jnp
from jax import lax
from jax.experimental import pallas as pl
from jax.experimental.pallas import tpu as pltpu


def _round_up(n, m):
    return ((n + m - 1) // m) * m


def _rnn_fused_kernel(seq_true, mask_tail,
                      x_ref, w_in_ref, w_rec_ref, w_out_ref, b_rec_ref, b_out_ref,
                      out_ref, hlast_ref, h_scr, htrace_scr):
    """One grid step == one (batch-block, time-chunk) tile, fully fused.

    x_ref:      (T, Bblk, Ipad)  raw inputs (time-major, zero-padded)
    w_in_ref:   (Ipad, N)        input weights        (resident)
    w_rec_ref:  (N, N)           recurrent weights    (resident)
    w_out_ref:  (N, Opad)        output weights       (resident)
    b_rec_ref:  (1, N)           recurrent bias       (resident)
    b_out_ref:  (1, Opad)        output bias          (resident)
    out_ref:    (T, Bblk, Opad)  output trace for this tile
    hlast_ref:  (Bblk, N)        final hidden state (written on last chunk)
    h_scr:      (Bblk, N)        hidden carry across time chunks
    htrace_scr: (T, Bblk, N)     chunk scratch: x-projection, then hidden trace
    """
    c = pl.program_id(1)
    n_chunks = pl.num_programs(1)
    t_chunk, b_blk, i_pad = x_ref.shape
    n = w_rec_ref.shape[0]
    o_pad = w_out_ref.shape[1]

    @pl.when(c == 0)
    def _():
        # h0 = zeros, matching RNNBase._initialize_hidden
        h_scr[...] = jnp.zeros_like(h_scr)

    # --- fused input projection: one chunk-level GEMM on the MXU ------------
    xp = jnp.dot(x_ref[...].reshape(t_chunk * b_blk, i_pad), w_in_ref[...],
                 preferred_element_type=jnp.float32) + b_rec_ref[...]
    htrace_scr[...] = xp.reshape(t_chunk, b_blk, n)

    # --- serial recurrence ----------------------------------------------------
    def step(t, h):
        # Read W_rec from VMEM inside the dot (no hoisted loop-live tile).
        pre = htrace_scr[t] + jnp.dot(h, w_rec_ref[...],
                                      preferred_element_type=jnp.float32)
        h_new = jnp.tanh(pre)
        htrace_scr[t] = h_new          # overwrite xp[t] with the hidden state
        if mask_tail:
            # Padded tail timesteps: freeze the carry at the true final state.
            t_global = c * t_chunk + t
            h_new = jnp.where(t_global < seq_true, h_new, h)
        return h_new

    h_last = lax.fori_loop(0, t_chunk, step, h_scr[...],
                           unroll=min(8, t_chunk))
    h_scr[...] = h_last

    @pl.when(c == n_chunks - 1)
    def _():
        hlast_ref[...] = h_scr[...]

    # --- fused output projection: one chunk-level GEMM on the MXU ------------
    out = jnp.dot(htrace_scr[...].reshape(t_chunk * b_blk, n), w_out_ref[...],
                  preferred_element_type=jnp.float32) + b_out_ref[...]
    out_ref[...] = out.reshape(t_chunk, b_blk, o_pad)


def rnn_forward(x, w_in, w_rec, b_rec, w_out, b_out, *,
                max_chunk=128, vmem_budget_bytes=48 << 20):
    """
    x:     (batch, seq, input_size)  -- PyTorch convention
    w_in:  (input_size, n_units)
    w_rec: (n_units, n_units)
    b_rec: (1, n_units)
    w_out: (n_units, output_size)
    b_out: (1, output_size)

    Returns:
      out: (batch, seq, output_size)
      h:   (1, batch, n_units)
    """
    batch, seq, input_size = x.shape
    n_units = w_rec.shape[0]
    output_size = w_out.shape[1]

    B = _round_up(batch, 8)          # sublane alignment
    N = _round_up(n_units, 128)      # lane alignment
    I = _round_up(input_size, 128)
    O = _round_up(output_size, 128)

    # Two batch blocks when possible so v7x can shard them across its two
    # TensorCores; neutral on single-core v5e/v6e.
    n_bblk = 2 if (B >= 16 and B % 16 == 0) else 1
    b_blk = B // n_bblk

    # Size the time chunk against a v7x-safe VMEM budget (64 MiB/TC physical).
    w_bytes = (I * N + N * N + N * O + N + O) * 4      # resident weights/biases
    scr_bytes = b_blk * N * 4                          # hidden carry
    per_t = (2 * I + 2 * O + N) * b_blk * 4            # x/out double-buf + trace
    t_budget = max(1, (vmem_budget_bytes - 2 * w_bytes - scr_bytes) // per_t)
    T = int(max(1, min(max_chunk, t_budget, seq)))
    seq_pad = _round_up(seq, T)
    n_chunks = seq_pad // T

    est_bytes = 2 * w_bytes + scr_bytes + per_t * T
    vmem_limit = int(min(max(2 * est_bytes + (8 << 20), 32 << 20), 56 << 20))

    f32 = jnp.float32
    # Pad on the cheap (seq, B, input_size) side, time-major for the kernel.
    xt = jnp.transpose(x.astype(f32), (1, 0, 2))
    xt = jnp.pad(xt, ((0, seq_pad - seq), (0, B - batch), (0, I - input_size)))
    # Zero-padded weights keep the padded hidden/output columns exactly 0.
    w_in_p = jnp.pad(w_in.astype(f32), ((0, I - input_size), (0, N - n_units)))
    w_rec_p = jnp.pad(w_rec.astype(f32), ((0, N - n_units), (0, N - n_units)))
    w_out_p = jnp.pad(w_out.astype(f32), ((0, N - n_units), (0, O - output_size)))
    b_rec_p = jnp.pad(b_rec.astype(f32).reshape(1, -1),
                      ((0, 0), (0, N - n_units)))
    b_out_p = jnp.pad(b_out.astype(f32).reshape(1, -1),
                      ((0, 0), (0, O - output_size)))

    kernel = functools.partial(_rnn_fused_kernel, seq, seq_pad != seq)

    def build(single_buffer_weights):
        w_kw = dict(pipeline_mode=pl.Buffered(1)) if single_buffer_weights else {}

        def resident(shape):
            return pl.BlockSpec(shape, lambda b, c: (0, 0), **w_kw)

        grid_spec = pltpu.PrefetchScalarGridSpec(
            num_scalar_prefetch=0,
            grid=(n_bblk, n_chunks),
            in_specs=[
                pl.BlockSpec((T, b_blk, I), lambda b, c: (c, b, 0)),  # x chunk
                resident((I, N)),        # W_in
                resident((N, N)),        # W_rec
                resident((N, O)),        # W_out
                resident((1, N)),        # b_rec
                resident((1, O)),        # b_out
            ],
            out_specs=[
                pl.BlockSpec((T, b_blk, O), lambda b, c: (c, b, 0)),  # out trace
                pl.BlockSpec((b_blk, N), lambda b, c: (b, 0)),        # final h
            ],
            scratch_shapes=[
                pltpu.VMEM((b_blk, N), jnp.float32),       # hidden carry
                pltpu.VMEM((T, b_blk, N), jnp.float32),    # chunk hidden trace
            ],
        )
        return pl.pallas_call(
            kernel,
            out_shape=(jax.ShapeDtypeStruct((seq_pad, B, O), jnp.float32),
                       jax.ShapeDtypeStruct((B, N), jnp.float32)),
            grid_spec=grid_spec,
            compiler_params=pltpu.CompilerParams(
                dimension_semantics=("parallel", "arbitrary"),
                vmem_limit_bytes=vmem_limit,
            ),
        )

    args = (xt, w_in_p, w_rec_p, w_out_p, b_rec_p, b_out_p)
    try:
        out_p, h_last_p = build(True)(*args)
    except Exception:
        # pl.Buffered(1) not supported on this jax build -> default buffering.
        out_p, h_last_p = build(False)(*args)

    out = jnp.transpose(out_p[:seq, :batch, :output_size], (1, 0, 2))
    h_final = h_last_p[:batch, :n_units][None, :, :]
    return out, h_final


def _uniform(key, shape, fan_in):
    # PyTorch nn.Linear-style init: U(-1/sqrt(fan_in), 1/sqrt(fan_in))
    bound = 1.0 / jnp.sqrt(jnp.float32(fan_in))
    return jax.random.uniform(key, shape, jnp.float32, -bound, bound)


def _reference_rnn(x, w_in, w_rec, b_rec, w_out, b_out):
    """Pure-JAX reference for correctness checking."""
    batch, seq, _ = x.shape
    n_units = w_rec.shape[0]
    h = jnp.zeros((batch, n_units), jnp.float32)
    outs = []
    for t in range(seq):
        h = jnp.tanh(jnp.dot(x[:, t, :], w_in, precision="highest")
                     + jnp.dot(h, w_rec, precision="highest") + b_rec)
        outs.append(jnp.dot(h, w_out, precision="highest") + b_out)
    return jnp.stack(outs, axis=1), h[None, :, :]


if __name__ == "__main__":
    # RNNBase(input_size=3, output_size=2, n_units=32); batch=2, seq=8
    input_size, output_size, n_units = 3, 2, 32
    batch, seq = 2, 8

    key = jax.random.PRNGKey(0)
    kx, k1, k2, k3, k4, k5 = jax.random.split(key, 6)

    x = jax.random.normal(kx, (batch, seq, input_size), jnp.float32)
    w_in = _uniform(k1, (input_size, n_units), input_size)
    w_rec = _uniform(k2, (n_units, n_units), n_units)
    b_rec = _uniform(k3, (1, n_units), n_units)
    w_out = _uniform(k4, (n_units, output_size), n_units)
    b_out = _uniform(k5, (1, output_size), n_units)

    out, h = rnn_forward(x, w_in, w_rec, b_rec, w_out, b_out)
    jax.block_until_ready((out, h))

    out_ref, h_ref = _reference_rnn(x, w_in, w_rec, b_rec, w_out, b_out)
    assert out.shape == (batch, seq, output_size)
    assert h.shape == (1, batch, n_units)
    assert jnp.allclose(out, out_ref, atol=1e-5, rtol=1e-5)
    assert jnp.allclose(h, h_ref, atol=1e-5, rtol=1e-5)

    print("KERNEL_OK")
</pallas_src>

<mosaic_0001>
module attributes {stable_mosaic.version = 11 : i64} {
  func.func @_rnn_fused_kernel(%arg0: i32, %arg1: i32, %arg2: memref<8x8x128xf32, #tpu.memory_space<vmem>>, %arg3: memref<128x128xf32, #tpu.memory_space<vmem>>, %arg4: memref<128x128xf32, #tpu.memory_space<vmem>>, %arg5: memref<128x128xf32, #tpu.memory_space<vmem>>, %arg6: memref<1x128xf32, #tpu.memory_space<vmem>>, %arg7: memref<1x128xf32, #tpu.memory_space<vmem>>, %arg8: memref<8x8x128xf32, #tpu.memory_space<vmem>>, %arg9: memref<8x128xf32, #tpu.memory_space<vmem>>, %arg10: memref<8x128xf32, #tpu.memory_space<vmem>>, %arg11: memref<8x8x128xf32, #tpu.memory_space<vmem>>) attributes {dimension_semantics = [#tpu.dimension_semantics<parallel>, #tpu.dimension_semantics<arbitrary>], iteration_bounds = array<i64: 1, 1>, scalar_prefetch = 0 : i64, scratch_operands = 2 : i64, tpu.core_type = #tpu.core_type<tc>, window_params = [{transform_indices = @transform_0, window_bounds = array<i64: 8, 8, 128>}, {pipeline_mode = #tpu.pipeline_mode<synchronous>, transform_indices = @transform_1, window_bounds = array<i64: 128, 128>}, {pipeline_mode = #tpu.pipeline_mode<synchronous>, transform_indices = @transform_2, window_bounds = array<i64: 128, 128>}, {pipeline_mode = #tpu.pipeline_mode<synchronous>, transform_indices = @transform_3, window_bounds = array<i64: 128, 128>}, {pipeline_mode = #tpu.pipeline_mode<synchronous>, transform_indices = @transform_4, window_bounds = array<i64: 1, 128>}, {pipeline_mode = #tpu.pipeline_mode<synchronous>, transform_indices = @transform_5, window_bounds = array<i64: 1, 128>}, {transform_indices = @transform_6, window_bounds = array<i64: 8, 8, 128>}, {transform_indices = @transform_7, window_bounds = array<i64: 8, 128>}]} {
    %c0_i32 = arith.constant 0 : i32
    %0 = arith.cmpi eq, %arg1, %c0_i32 : i32
    %1 = arith.extui %0 : i1 to i32
    %c0_i32_0 = arith.constant 0 : i32
    %2 = arith.cmpi ne, %1, %c0_i32_0 : i32
    scf.if %2 {
      %cst_84 = arith.constant 0.000000e+00 : f32
      %114 = vector.broadcast %cst_84 : f32 to vector<8x128xf32>
      %c0_85 = arith.constant 0 : index
      %c0_86 = arith.constant 0 : index
      %115 = vector.load %arg10[%c0_85, %c0_86] : memref<8x128xf32, #tpu.memory_space<vmem>>, vector<8x128xf32>
      tpu.vector_store %arg10[%c0_85, %c0_86], %114 {strides = array<i32>} : memref<8x128xf32, #tpu.memory_space<vmem>>, vector<8x128xf32>,
    } else {
    }
    %c0 = arith.constant 0 : index
    %c0_1 = arith.constant 0 : index
    %c0_2 = arith.constant 0 : index
    %3 = vector.load %arg2[%c0, %c0_1, %c0_2] : memref<8x8x128xf32, #tpu.memory_space<vmem>>, vector<8x8x128xf32>
    %4 = vector.shape_cast %3 : vector<8x8x128xf32> to vector<64x128xf32>
    %c0_3 = arith.constant 0 : index
    %c0_4 = arith.constant 0 : index
    %5 = vector.load %arg3[%c0_3, %c0_4] : memref<128x128xf32, #tpu.memory_space<vmem>>, vector<128x128xf32>
    %cst = arith.constant dense<0.000000e+00> : vector<64x128xf32>
    %6 = tpu.matmul %4, %5, %cst {dimension_numbers = #tpu.dot_dimension_numbers<[1], [0], [0], [1], [0, 0, 1, 1], [], []>} : vector<64x128xf32>, vector<128x128xf32>, vector<64x128xf32> -> vector<64x128xf32>
    %c0_5 = arith.constant 0 : index
    %c0_6 = arith.constant 0 : index
    %7 = vector.load %arg6[%c0_5, %c0_6] : memref<1x128xf32, #tpu.memory_space<vmem>>, vector<1x128xf32>
    %8 = vector.broadcast %7 : vector<1x128xf32> to vector<64x128xf32>
    %9 = arith.addf %6, %8 : vector<64x128xf32>
    %10 = vector.shape_cast %9 : vector<64x128xf32> to vector<8x8x128xf32>
    %c0_7 = arith.constant 0 : index
    %c0_8 = arith.constant 0 : index
    %c0_9 = arith.constant 0 : index
    %11 = vector.load %arg11[%c0_7, %c0_8, %c0_9] : memref<8x8x128xf32, #tpu.memory_space<vmem>>, vector<8x8x128xf32>
    tpu.vector_store %arg11[%c0_7, %c0_8, %c0_9], %10 {strides = array<i32>} : memref<8x8x128xf32, #tpu.memory_space<vmem>>, vector<8x8x128xf32>,
    %c0_10 = arith.constant 0 : index
    %c0_11 = arith.constant 0 : index
    %12 = vector.load %arg10[%c0_10, %c0_11] : memref<8x128xf32, #tpu.memory_space<vmem>>, vector<8x128xf32>
    %c0_i32_12 = arith.constant 0 : i32
    %13 = arith.index_cast %c0_i32_12 : i32 to index
    %c0_13 = arith.constant 0 : index
    %c0_14 = arith.constant 0 : index
    %14 = vector.load %arg11[%13, %c0_13, %c0_14] : memref<8x8x128xf32, #tpu.memory_space<vmem>>, vector<1x8x128xf32>
    %15 = vector.shape_cast %14 : vector<1x8x128xf32> to vector<8x128xf32>
    %c0_15 = arith.constant 0 : index
    %c0_16 = arith.constant 0 : index
    %16 = vector.load %arg4[%c0_15, %c0_16] : memref<128x128xf32, #tpu.memory_space<vmem>>, vector<128x128xf32>
    %cst_17 = arith.constant dense<0.000000e+00> : vector<8x128xf32>
    %17 = tpu.matmul %12, %16, %cst_17 {dimension_numbers = #tpu.dot_dimension_numbers<[1], [0], [0], [1], [0, 0, 1, 1], [], []>} : vector<8x128xf32>, vector<128x128xf32>, vector<8x128xf32> -> vector<8x128xf32>
    %18 = arith.addf %15, %17 : vector<8x128xf32>
    %19 = math.tanh %18 : vector<8x128xf32>
    %20 = arith.index_cast %c0_i32_12 : i32 to index
    %c0_18 = arith.constant 0 : index
    %c0_19 = arith.constant 0 : index
    %21 = vector.load %arg11[%20, %c0_18, %c0_19] : memref<8x8x128xf32, #tpu.memory_space<vmem>>, vector<1x8x128xf32>
    %22 = vector.shape_cast %21 : vector<1x8x128xf32> to vector<8x128xf32>
    %23 = vector.shape_cast %19 : vector<8x128xf32> to vector<1x8x128xf32>
    tpu.vector_store %arg11[%20, %c0_18, %c0_19], %23 {strides = array<i32>} : memref<8x8x128xf32, #tpu.memory_space<vmem>>, vector<1x8x128xf32>,
    %c1_i32 = arith.constant 1 : i32
    %24 = arith.index_cast %c1_i32 : i32 to index
    %c0_20 = arith.constant 0 : index
    %c0_21 = arith.constant 0 : index
    %25 = vector.load %arg11[%24, %c0_20, %c0_21] : memref<8x8x128xf32, #tpu.memory_space<vmem>>, vector<1x8x128xf32>
    %26 = vector.shape_cast %25 : vector<1x8x128xf32> to vector<8x128xf32>
    %c0_22 = arith.constant 0 : index
    %c0_23 = arith.constant 0 : index
    %27 = vector.load %arg4[%c0_22, %c0_23] : memref<128x128xf32, #tpu.memory_space<vmem>>, vector<128x128xf32>
    %cst_24 = arith.constant dense<0.000000e+00> : vector<8x128xf32>
    %28 = tpu.matmul %19, %27, %cst_24 {dimension_numbers = #tpu.dot_dimension_numbers<[1], [0], [0], [1], [0, 0, 1, 1], [], []>} : vector<8x128xf32>, vector<128x128xf32>, vector<8x128xf32> -> vector<8x128xf32>
    %29 = arith.addf %26, %28 : vector<8x128xf32>
    %30 = math.tanh %29 : vector<8x128xf32>
    %31 = arith.index_cast %c1_i32 : i32 to index
    %c0_25 = arith.constant 0 : index
    %c0_26 = arith.constant 0 : index
    %32 = vector.load %arg11[%31, %c0_25, %c0_26] : memref<8x8x128xf32, #tpu.memory_space<vmem>>, vector<1x8x128xf32>
    %33 = vector.shape_cast %32 : vector<1x8x128xf32> to vector<8x128xf32>
    %34 = vector.shape_cast %30 : vector<8x128xf32> to vector<1x8x128xf32>
    tpu.vector_store %arg11[%31, %c0_25, %c0_26], %34 {strides = array<i32>} : memref<8x8x128xf32, #tpu.memory_space<vmem>>, vector<1x8x128xf32>,
    %c2_i32 = arith.constant 2 : i32
    %35 = arith.index_cast %c2_i32 : i32 to index
    %c0_27 = arith.constant 0 : index
    %c0_28 = arith.constant 0 : index
    %36 = vector.load %arg11[%35, %c0_27, %c0_28] : memref<8x8x128xf32, #tpu.memory_space<vmem>>, vector<1x8x128xf32>
    %37 = vector.shape_cast %36 : vector<1x8x128xf32> to vector<8x128xf32>
    %c0_29 = arith.constant 0 : index
    %c0_30 = arith.constant 0 : index
    %38 = vector.load %arg4[%c0_29, %c0_30] : memref<128x128xf32, #tpu.memory_space<vmem>>, vector<128x128xf32>
    %cst_31 = arith.constant dense<0.000000e+00> : vector<8x128xf32>
    %39 = tpu.matmul %30, %38, %cst_31 {dimension_numbers = #tpu.dot_dimension_numbers<[1], [0], [0], [1], [0, 0, 1, 1], [], []>} : vector<8x128xf32>, vector<128x128xf32>, vector<8x128xf32> -> vector<8x128xf32>
    %40 = arith.addf %37, %39 : vector<8x128xf32>
    %41 = math.tanh %40 : vector<8x128xf32>
    %42 = arith.index_cast %c2_i32 : i32 to index
    %c0_32 = arith.constant 0 : index
    %c0_33 = arith.constant 0 : index
    %43 = vector.load %arg11[%42, %c0_32, %c0_33] : memref<8x8x128xf32, #tpu.memory_space<vmem>>, vector<1x8x128xf32>
    %44 = vector.shape_cast %43 : vector<1x8x128xf32> to vector<8x128xf32>
    %45 = vector.shape_cast %41 : vector<8x128xf32> to vector<1x8x128xf32>
    tpu.vector_store %arg11[%42, %c0_32, %c0_33], %45 {strides = array<i32>} : memref<8x8x128xf32, #tpu.memory_space<vmem>>, vector<1x8x128xf32>,
    %c3_i32 = arith.constant 3 : i32
    %46 = arith.index_cast %c3_i32 : i32 to index
    %c0_34 = arith.constant 0 : index
    %c0_35 = arith.constant 0 : index
    %47 = vector.load %arg11[%46, %c0_34, %c0_35] : memref<8x8x128xf32, #tpu.memory_space<vmem>>, vector<1x8x128xf32>
    %48 = vector.shape_cast %47 : vector<1x8x128xf32> to vector<8x128xf32>
    %c0_36 = arith.constant 0 : index
    %c0_37 = arith.constant 0 : index
    %49 = vector.load %arg4[%c0_36, %c0_37] : memref<128x128xf32, #tpu.memory_space<vmem>>, vector<128x128xf32>
    %cst_38 = arith.constant dense<0.000000e+00> : vector<8x128xf32>
    %50 = tpu.matmul %41, %49, %cst_38 {dimension_numbers = #tpu.dot_dimension_numbers<[1], [0], [0], [1], [0, 0, 1, 1], [], []>} : vector<8x128xf32>, vector<128x128xf32>, vector<8x128xf32> -> vector<8x128xf32>
    %51 = arith.addf %48, %50 : vector<8x128xf32>
    %52 = math.tanh %51 : vector<8x128xf32>
    %53 = arith.index_cast %c3_i32 : i32 to index
    %c0_39 = arith.constant 0 : index
    %c0_40 = arith.constant 0 : index
    %54 = vector.load %arg11[%53, %c0_39, %c0_40] : memref<8x8x128xf32, #tpu.memory_space<vmem>>, vector<1x8x128xf32>
    %55 = vector.shape_cast %54 : vector<1x8x128xf32> to vector<8x128xf32>
    %56 = vector.shape_cast %52 : vector<8x128xf32> to vector<1x8x128xf32>
    tpu.vector_store %arg11[%53, %c0_39, %c0_40], %56 {strides = array<i32>} : memref<8x8x128xf32, #tpu.memory_space<vmem>>, vector<1x8x128xf32>,
    %c4_i32 = arith.constant 4 : i32
    %57 = arith.index_cast %c4_i32 : i32 to index
    %c0_41 = arith.constant 0 : index
    %c0_42 = arith.constant 0 : index
    %58 = vector.load %arg11[%57, %c0_41, %c0_42] : memref<8x8x128xf32, #tpu.memory_space<vmem>>, vector<1x8x128xf32>
    %59 = vector.shape_cast %58 : vector<1x8x128xf32> to vector<8x128xf32>
    %c0_43 = arith.constant 0 : index
    %c0_44 = arith.constant 0 : index
    %60 = vector.load %arg4[%c0_43, %c0_44] : memref<128x128xf32, #tpu.memory_space<vmem>>, vector<128x128xf32>
    %cst_45 = arith.constant dense<0.000000e+00> : vector<8x128xf32>
    %61 = tpu.matmul %52, %60, %cst_45 {dimension_numbers = #tpu.dot_dimension_numbers<[1], [0], [0], [1], [0, 0, 1, 1], [], []>} : vector<8x128xf32>, vector<128x128xf32>, vector<8x128xf32> -> vector<8x128xf32>
    %62 = arith.addf %59, %61 : vector<8x128xf32>
    %63 = math.tanh %62 : vector<8x128xf32>
    %64 = arith.index_cast %c4_i32 : i32 to index
    %c0_46 = arith.constant 0 : index
    %c0_47 = arith.constant 0 : index
    %65 = vector.load %arg11[%64, %c0_46, %c0_47] : memref<8x8x128xf32, #tpu.memory_space<vmem>>, vector<1x8x128xf32>
    %66 = vector.shape_cast %65 : vector<1x8x128xf32> to vector<8x128xf32>
    %67 = vector.shape_cast %63 : vector<8x128xf32> to vector<1x8x128xf32>
    tpu.vector_store %arg11[%64, %c0_46, %c0_47], %67 {strides = array<i32>} : memref<8x8x128xf32, #tpu.memory_space<vmem>>, vector<1x8x128xf32>,
    %c5_i32 = arith.constant 5 : i32
    %68 = arith.index_cast %c5_i32 : i32 to index
    %c0_48 = arith.constant 0 : index
    %c0_49 = arith.constant 0 : index
    %69 = vector.load %arg11[%68, %c0_48, %c0_49] : memref<8x8x128xf32, #tpu.memory_space<vmem>>, vector<1x8x128xf32>
    %70 = vector.shape_cast %69 : vector<1x8x128xf32> to vector<8x128xf32>
    %c0_50 = arith.constant 0 : index
    %c0_51 = arith.constant 0 : index
    %71 = vector.load %arg4[%c0_50, %c0_51] : memref<128x128xf32, #tpu.memory_space<vmem>>, vector<128x128xf32>
    %cst_52 = arith.constant dense<0.000000e+00> : vector<8x128xf32>
    %72 = tpu.matmul %63, %71, %cst_52 {dimension_numbers = #tpu.dot_dimension_numbers<[1], [0], [0], [1], [0, 0, 1, 1], [], []>} : vector<8x128xf32>, vector<128x128xf32>, vector<8x128xf32> -> vector<8x128xf32>
    %73 = arith.addf %70, %72 : vector<8x128xf32>
    %74 = math.tanh %73 : vector<8x128xf32>
    %75 = arith.index_cast %c5_i32 : i32 to index
    %c0_53 = arith.constant 0 : index
    %c0_54 = arith.constant 0 : index
    %76 = vector.load %arg11[%75, %c0_53, %c0_54] : memref<8x8x128xf32, #tpu.memory_space<vmem>>, vector<1x8x128xf32>
    %77 = vector.shape_cast %76 : vector<1x8x128xf32> to vector<8x128xf32>
    %78 = vector.shape_cast %74 : vector<8x128xf32> to vector<1x8x128xf32>
    tpu.vector_store %arg11[%75, %c0_53, %c0_54], %78 {strides = array<i32>} : memref<8x8x128xf32, #tpu.memory_space<vmem>>, vector<1x8x128xf32>,
    %c6_i32 = arith.constant 6 : i32
    %79 = arith.index_cast %c6_i32 : i32 to index
    %c0_55 = arith.constant 0 : index
    %c0_56 = arith.constant 0 : index
    %80 = vector.load %arg11[%79, %c0_55, %c0_56] : memref<8x8x128xf32, #tpu.memory_space<vmem>>, vector<1x8x128xf32>
    %81 = vector.shape_cast %80 : vector<1x8x128xf32> to vector<8x128xf32>
    %c0_57 = arith.constant 0 : index
    %c0_58 = arith.constant 0 : index
    %82 = vector.load %arg4[%c0_57, %c0_58] : memref<128x128xf32, #tpu.memory_space<vmem>>, vector<128x128xf32>
    %cst_59 = arith.constant dense<0.000000e+00> : vector<8x128xf32>
    %83 = tpu.matmul %74, %82, %cst_59 {dimension_numbers = #tpu.dot_dimension_numbers<[1], [0], [0], [1], [0, 0, 1, 1], [], []>} : vector<8x128xf32>, vector<128x128xf32>, vector<8x128xf32> -> vector<8x128xf32>
    %84 = arith.addf %81, %83 : vector<8x128xf32>
    %85 = math.tanh %84 : vector<8x128xf32>
    %86 = arith.index_cast %c6_i32 : i32 to index
    %c0_60 = arith.constant 0 : index
    %c0_61 = arith.constant 0 : index
    %87 = vector.load %arg11[%86, %c0_60, %c0_61] : memref<8x8x128xf32, #tpu.memory_space<vmem>>, vector<1x8x128xf32>
    %88 = vector.shape_cast %87 : vector<1x8x128xf32> to vector<8x128xf32>
    %89 = vector.shape_cast %85 : vector<8x128xf32> to vector<1x8x128xf32>
    tpu.vector_store %arg11[%86, %c0_60, %c0_61], %89 {strides = array<i32>} : memref<8x8x128xf32, #tpu.memory_space<vmem>>, vector<1x8x128xf32>,
    %c7_i32 = arith.constant 7 : i32
    %90 = arith.index_cast %c7_i32 : i32 to index
    %c0_62 = arith.constant 0 : index
    %c0_63 = arith.constant 0 : index
    %91 = vector.load %arg11[%90, %c0_62, %c0_63] : memref<8x8x128xf32, #tpu.memory_space<vmem>>, vector<1x8x128xf32>
    %92 = vector.shape_cast %91 : vector<1x8x128xf32> to vector<8x128xf32>
    %c0_64 = arith.constant 0 : index
    %c0_65 = arith.constant 0 : index
    %93 = vector.load %arg4[%c0_64, %c0_65] : memref<128x128xf32, #tpu.memory_space<vmem>>, vector<128x128xf32>
    %cst_66 = arith.constant dense<0.000000e+00> : vector<8x128xf32>
    %94 = tpu.matmul %85, %93, %cst_66 {dimension_numbers = #tpu.dot_dimension_numbers<[1], [0], [0], [1], [0, 0, 1, 1], [], []>} : vector<8x128xf32>, vector<128x128xf32>, vector<8x128xf32> -> vector<8x128xf32>
    %95 = arith.addf %92, %94 : vector<8x128xf32>
    %96 = math.tanh %95 : vector<8x128xf32>
    %97 = arith.index_cast %c7_i32 : i32 to index
    %c0_67 = arith.constant 0 : index
    %c0_68 = arith.constant 0 : index
    %98 = vector.load %arg11[%97, %c0_67, %c0_68] : memref<8x8x128xf32, #tpu.memory_space<vmem>>, vector<1x8x128xf32>
    %99 = vector.shape_cast %98 : vector<1x8x128xf32> to vector<8x128xf32>
    %100 = vector.shape_cast %96 : vector<8x128xf32> to vector<1x8x128xf32>
    tpu.vector_store %arg11[%97, %c0_67, %c0_68], %100 {strides = array<i32>} : memref<8x8x128xf32, #tpu.memory_space<vmem>>, vector<1x8x128xf32>,
    %c8_i32 = arith.constant 8 : i32
    %c0_69 = arith.constant 0 : index
    %c0_70 = arith.constant 0 : index
    %101 = vector.load %arg10[%c0_69, %c0_70] : memref<8x128xf32, #tpu.memory_space<vmem>>, vector<8x128xf32>
    tpu.vector_store %arg10[%c0_69, %c0_70], %96 {strides = array<i32>} : memref<8x128xf32, #tpu.memory_space<vmem>>, vector<8x128xf32>,
    %c0_i32_71 = arith.constant 0 : i32
    %102 = arith.cmpi eq, %arg1, %c0_i32_71 : i32
    %103 = arith.extui %102 : i1 to i32
    %c0_i32_72 = arith.constant 0 : i32
    %104 = arith.cmpi ne, %103, %c0_i32_72 : i32
    scf.if %104 {
      %c0_84 = arith.constant 0 : index
      %c0_85 = arith.constant 0 : index
      %114 = vector.load %arg10[%c0_84, %c0_85] : memref<8x128xf32, #tpu.memory_space<vmem>>, vector<8x128xf32>
      %c0_86 = arith.constant 0 : index
      %c0_87 = arith.constant 0 : index
      %115 = vector.load %arg9[%c0_86, %c0_87] : memref<8x128xf32, #tpu.memory_space<vmem>>, vector<8x128xf32>
      tpu.vector_store %arg9[%c0_86, %c0_87], %114 {strides = array<i32>} : memref<8x128xf32, #tpu.memory_space<vmem>>, vector<8x128xf32>,
    } else {
    }
    %c0_73 = arith.constant 0 : index
    %c0_74 = arith.constant 0 : index
    %c0_75 = arith.constant 0 : index
    %105 = vector.load %arg11[%c0_73, %c0_74, %c0_75] : memref<8x8x128xf32, #tpu.memory_space<vmem>>, vector<8x8x128xf32>
    %106 = vector.shape_cast %105 : vector<8x8x128xf32> to vector<64x128xf32>
    %c0_76 = arith.constant 0 : index
    %c0_77 = arith.constant 0 : index
    %107 = vector.load %arg5[%c0_76, %c0_77] : memref<128x128xf32, #tpu.memory_space<vmem>>, vector<128x128xf32>
    %cst_78 = arith.constant dense<0.000000e+00> : vector<64x128xf32>
    %108 = tpu.matmul %106, %107, %cst_78 {dimension_numbers = #tpu.dot_dimension_numbers<[1], [0], [0], [1], [0, 0, 1, 1], [], []>} : vector<64x128xf32>, vector<128x128xf32>, vector<64x128xf32> -> vector<64x128xf32>
    %c0_79 = arith.constant 0 : index
    %c0_80 = arith.constant 0 : index
    %109 = vector.load %arg7[%c0_79, %c0_80] : memref<1x128xf32, #tpu.memory_space<vmem>>, vector<1x128xf32>
    %110 = vector.broadcast %109 : vector<1x128xf32> to vector<64x128xf32>
    %111 = arith.addf %108, %110 : vector<64x128xf32>
    %112 = vector.shape_cast %111 : vector<64x128xf32> to vector<8x8x128xf32>
    %c0_81 = arith.constant 0 : index
    %c0_82 = arith.constant 0 : index
    %c0_83 = arith.constant 0 : index
    %113 = vector.load %arg8[%c0_81, %c0_82, %c0_83] : memref<8x8x128xf32, #tpu.memory_space<vmem>>, vector<8x8x128xf32>
    tpu.vector_store %arg8[%c0_81, %c0_82, %c0_83], %112 {strides = array<i32>} : memref<8x8x128xf32, #tpu.memory_space<vmem>>, vector<8x8x128xf32>,
    return
  }
  func.func @transform_0(%arg0: i32, %arg1: i32) -> (i32, i32, i32) {
    %c0_i32 = arith.constant 0 : i32
    %c0_i32_0 = arith.constant 0 : i32
    return %arg1, %arg0, %c0_i32 : i32, i32, i32
  }
  func.func @transform_1(%arg0: i32, %arg1: i32) -> (i32, i32) {
    %c0_i32 = arith.constant 0 : i32
    %c0_i32_0 = arith.constant 0 : i32
    %c0_i32_1 = arith.constant 0 : i32
    return %c0_i32, %c0_i32_0 : i32, i32
  }
  func.func @transform_2(%arg0: i32, %arg1: i32) -> (i32, i32) {
    %c0_i32 = arith.constant 0 : i32
    %c0_i32_0 = arith.constant 0 : i32
    %c0_i32_1 = arith.constant 0 : i32
    return %c0_i32, %c0_i32_0 : i32, i32
  }
  func.func @transform_3(%arg0: i32, %arg1: i32) -> (i32, i32) {
    %c0_i32 = arith.constant 0 : i32
    %c0_i32_0 = arith.constant 0 : i32
    %c0_i32_1 = arith.constant 0 : i32
    return %c0_i32, %c0_i32_0 : i32, i32
  }
  func.func @transform_4(%arg0: i32, %arg1: i32) -> (i32, i32) {
    %c0_i32 = arith.constant 0 : i32
    %c0_i32_0 = arith.constant 0 : i32
    %c0_i32_1 = arith.constant 0 : i32
    return %c0_i32, %c0_i32_0 : i32, i32
  }
  func.func @transform_5(%arg0: i32, %arg1: i32) -> (i32, i32) {
    %c0_i32 = arith.constant 0 : i32
    %c0_i32_0 = arith.constant 0 : i32
    %c0_i32_1 = arith.constant 0 : i32
    return %c0_i32, %c0_i32_0 : i32, i32
  }
  func.func @transform_6(%arg0: i32, %arg1: i32) -> (i32, i32, i32) {
    %c0_i32 = arith.constant 0 : i32
    %c0_i32_0 = arith.constant 0 : i32
    return %arg1, %arg0, %c0_i32 : i32, i32, i32
  }
  func.func @transform_7(%arg0: i32, %arg1: i32) -> (i32, i32) {
    %c0_i32 = arith.constant 0 : i32
    %c0_i32_0 = arith.constant 0 : i32
    return %arg0, %c0_i32 : i32, i32
  }
}

module attributes {stable_mosaic.version = 11 : i64} {
  func.func @_rnn_fused_kernel(%arg0: i32, %arg1: i32, %arg2: memref<8x8x128xf32, #tpu.memory_space<vmem>>, %arg3: memref<128x128xf32, #tpu.memory_space<vmem>>, %arg4: memref<128x128xf32, #tpu.memory_space<vmem>>, %arg5: memref<128x128xf32, #tpu.memory_space<vmem>>, %arg6: memref<1x128xf32, #tpu.memory_space<vmem>>, %arg7: memref<1x128xf32, #tpu.memory_space<vmem>>, %arg8: memref<8x8x128xf32, #tpu.memory_space<vmem>>, %arg9: memref<8x128xf32, #tpu.memory_space<vmem>>, %arg10: memref<8x128xf32, #tpu.memory_space<vmem>>, %arg11: memref<8x8x128xf32, #tpu.memory_space<vmem>>) attributes {dimension_semantics = [#tpu.dimension_semantics<parallel>, #tpu.dimension_semantics<arbitrary>], iteration_bounds = array<i64: 1, 1>, scalar_prefetch = 0 : i64, scratch_operands = 2 : i64, tpu.core_type = #tpu.core_type<tc>, window_params = [{transform_indices = @transform_0, window_bounds = array<i64: 8, 8, 128>}, {pipeline_mode = #tpu.pipeline_mode<synchronous>, transform_indices = @transform_1, window_bounds = array<i64: 128, 128>}, {pipeline_mode = #tpu.pipeline_mode<synchronous>, transform_indices = @transform_2, window_bounds = array<i64: 128, 128>}, {pipeline_mode = #tpu.pipeline_mode<synchronous>, transform_indices = @transform_3, window_bounds = array<i64: 128, 128>}, {pipeline_mode = #tpu.pipeline_mode<synchronous>, transform_indices = @transform_4, window_bounds = array<i64: 1, 128>}, {pipeline_mode = #tpu.pipeline_mode<synchronous>, transform_indices = @transform_5, window_bounds = array<i64: 1, 128>}, {transform_indices = @transform_6, window_bounds = array<i64: 8, 8, 128>}, {transform_indices = @transform_7, window_bounds = array<i64: 8, 128>}]} {
    %c0_i32 = arith.constant 0 : i32
    %0 = arith.cmpi eq, %arg1, %c0_i32 : i32
    %1 = arith.extui %0 : i1 to i32
    %c0_i32_0 = arith.constant 0 : i32
    %2 = arith.cmpi ne, %1, %c0_i32_0 : i32
    scf.if %2 {
      %cst_84 = arith.constant 0.000000e+00 : f32
      %114 = vector.broadcast %cst_84 : f32 to vector<8x128xf32>
      %c0_85 = arith.constant 0 : index
      %c0_86 = arith.constant 0 : index
      %115 = vector.load %arg10[%c0_85, %c0_86] : memref<8x128xf32, #tpu.memory_space<vmem>>, vector<8x128xf32>
      tpu.vector_store %arg10[%c0_85, %c0_86], %114 {strides = array<i32>} : memref<8x128xf32, #tpu.memory_space<vmem>>, vector<8x128xf32>,
    } else {
    }
    %c0 = arith.constant 0 : index
    %c0_1 = arith.constant 0 : index
    %c0_2 = arith.constant 0 : index
    %3 = vector.load %arg2[%c0, %c0_1, %c0_2] : memref<8x8x128xf32, #tpu.memory_space<vmem>>, vector<8x8x128xf32>
    %4 = vector.shape_cast %3 : vector<8x8x128xf32> to vector<64x128xf32>
    %c0_3 = arith.constant 0 : index
    %c0_4 = arith.constant 0 : index
    %5 = vector.load %arg3[%c0_3, %c0_4] : memref<128x128xf32, #tpu.memory_space<vmem>>, vector<128x128xf32>
    %cst = arith.constant dense<0.000000e+00> : vector<64x128xf32>
    %6 = tpu.matmul %4, %5, %cst {dimension_numbers = #tpu.dot_dimension_numbers<[1], [0], [0], [1], [0, 0, 1, 1], [], []>} : vector<64x128xf32>, vector<128x128xf32>, vector<64x128xf32> -> vector<64x128xf32>
    %c0_5 = arith.constant 0 : index
    %c0_6 = arith.constant 0 : index
    %7 = vector.load %arg6[%c0_5, %c0_6] : memref<1x128xf32, #tpu.memory_space<vmem>>, vector<1x128xf32>
    %8 = vector.broadcast %7 : vector<1x128xf32> to vector<64x128xf32>
    %9 = arith.addf %6, %8 : vector<64x128xf32>
    %10 = vector.shape_cast %9 : vector<64x128xf32> to vector<8x8x128xf32>
    %c0_7 = arith.constant 0 : index
    %c0_8 = arith.constant 0 : index
    %c0_9 = arith.constant 0 : index
    %11 = vector.load %arg11[%c0_7, %c0_8, %c0_9] : memref<8x8x128xf32, #tpu.memory_space<vmem>>, vector<8x8x128xf32>
    tpu.vector_store %arg11[%c0_7, %c0_8, %c0_9], %10 {strides = array<i32>} : memref<8x8x128xf32, #tpu.memory_space<vmem>>, vector<8x8x128xf32>,
    %c0_10 = arith.constant 0 : index
    %c0_11 = arith.constant 0 : index
    %12 = vector.load %arg10[%c0_10, %c0_11] : memref<8x128xf32, #tpu.memory_space<vmem>>, vector<8x128xf32>
    %c0_i32_12 = arith.constant 0 : i32
    %13 = arith.index_cast %c0_i32_12 : i32 to index
    %c0_13 = arith.constant 0 : index
    %c0_14 = arith.constant 0 : index
    %14 = vector.load %arg11[%13, %c0_13, %c0_14] : memref<8x8x128xf32, #tpu.memory_space<vmem>>, vector<1x8x128xf32>
    %15 = vector.shape_cast %14 : vector<1x8x128xf32> to vector<8x128xf32>
    %c0_15 = arith.constant 0 : index
    %c0_16 = arith.constant 0 : index
    %16 = vector.load %arg4[%c0_15, %c0_16] : memref<128x128xf32, #tpu.memory_space<vmem>>, vector<128x128xf32>
    %cst_17 = arith.constant dense<0.000000e+00> : vector<8x128xf32>
    %17 = tpu.matmul %12, %16, %cst_17 {dimension_numbers = #tpu.dot_dimension_numbers<[1], [0], [0], [1], [0, 0, 1, 1], [], []>} : vector<8x128xf32>, vector<128x128xf32>, vector<8x128xf32> -> vector<8x128xf32>
    %18 = arith.addf %15, %17 : vector<8x128xf32>
    %19 = math.tanh %18 : vector<8x128xf32>
    %20 = arith.index_cast %c0_i32_12 : i32 to index
    %c0_18 = arith.constant 0 : index
    %c0_19 = arith.constant 0 : index
    %21 = vector.load %arg11[%20, %c0_18, %c0_19] : memref<8x8x128xf32, #tpu.memory_space<vmem>>, vector<1x8x128xf32>
    %22 = vector.shape_cast %21 : vector<1x8x128xf32> to vector<8x128xf32>
    %23 = vector.shape_cast %19 : vector<8x128xf32> to vector<1x8x128xf32>
    tpu.vector_store %arg11[%20, %c0_18, %c0_19], %23 {strides = array<i32>} : memref<8x8x128xf32, #tpu.memory_space<vmem>>, vector<1x8x128xf32>,
    %c1_i32 = arith.constant 1 : i32
    %24 = arith.index_cast %c1_i32 : i32 to index
    %c0_20 = arith.constant 0 : index
    %c0_21 = arith.constant 0 : index
    %25 = vector.load %arg11[%24, %c0_20, %c0_21] : memref<8x8x128xf32, #tpu.memory_space<vmem>>, vector<1x8x128xf32>
    %26 = vector.shape_cast %25 : vector<1x8x128xf32> to vector<8x128xf32>
    %c0_22 = arith.constant 0 : index
    %c0_23 = arith.constant 0 : index
    %27 = vector.load %arg4[%c0_22, %c0_23] : memref<128x128xf32, #tpu.memory_space<vmem>>, vector<128x128xf32>
    %cst_24 = arith.constant dense<0.000000e+00> : vector<8x128xf32>
    %28 = tpu.matmul %19, %27, %cst_24 {dimension_numbers = #tpu.dot_dimension_numbers<[1], [0], [0], [1], [0, 0, 1, 1], [], []>} : vector<8x128xf32>, vector<128x128xf32>, vector<8x128xf32> -> vector<8x128xf32>
    %29 = arith.addf %26, %28 : vector<8x128xf32>
    %30 = math.tanh %29 : vector<8x128xf32>
    %31 = arith.index_cast %c1_i32 : i32 to index
    %c0_25 = arith.constant 0 : index
    %c0_26 = arith.constant 0 : index
    %32 = vector.load %arg11[%31, %c0_25, %c0_26] : memref<8x8x128xf32, #tpu.memory_space<vmem>>, vector<1x8x128xf32>
    %33 = vector.shape_cast %32 : vector<1x8x128xf32> to vector<8x128xf32>
    %34 = vector.shape_cast %30 : vector<8x128xf32> to vector<1x8x128xf32>
    tpu.vector_store %arg11[%31, %c0_25, %c0_26], %34 {strides = array<i32>} : memref<8x8x128xf32, #tpu.memory_space<vmem>>, vector<1x8x128xf32>,
    %c2_i32 = arith.constant 2 : i32
    %35 = arith.index_cast %c2_i32 : i32 to index
    %c0_27 = arith.constant 0 : index
    %c0_28 = arith.constant 0 : index
    %36 = vector.load %arg11[%35, %c0_27, %c0_28] : memref<8x8x128xf32, #tpu.memory_space<vmem>>, vector<1x8x128xf32>
    %37 = vector.shape_cast %36 : vector<1x8x128xf32> to vector<8x128xf32>
    %c0_29 = arith.constant 0 : index
    %c0_30 = arith.constant 0 : index
    %38 = vector.load %arg4[%c0_29, %c0_30] : memref<128x128xf32, #tpu.memory_space<vmem>>, vector<128x128xf32>
    %cst_31 = arith.constant dense<0.000000e+00> : vector<8x128xf32>
    %39 = tpu.matmul %30, %38, %cst_31 {dimension_numbers = #tpu.dot_dimension_numbers<[1], [0], [0], [1], [0, 0, 1, 1], [], []>} : vector<8x128xf32>, vector<128x128xf32>, vector<8x128xf32> -> vector<8x128xf32>
    %40 = arith.addf %37, %39 : vector<8x128xf32>
    %41 = math.tanh %40 : vector<8x128xf32>
    %42 = arith.index_cast %c2_i32 : i32 to index
    %c0_32 = arith.constant 0 : index
    %c0_33 = arith.constant 0 : index
    %43 = vector.load %arg11[%42, %c0_32, %c0_33] : memref<8x8x128xf32, #tpu.memory_space<vmem>>, vector<1x8x128xf32>
    %44 = vector.shape_cast %43 : vector<1x8x128xf32> to vector<8x128xf32>
    %45 = vector.shape_cast %41 : vector<8x128xf32> to vector<1x8x128xf32>
    tpu.vector_store %arg11[%42, %c0_32, %c0_33], %45 {strides = array<i32>} : memref<8x8x128xf32, #tpu.memory_space<vmem>>, vector<1x8x128xf32>,
    %c3_i32 = arith.constant 3 : i32
    %46 = arith.index_cast %c3_i32 : i32 to index
    %c0_34 = arith.constant 0 : index
    %c0_35 = arith.constant 0 : index
    %47 = vector.load %arg11[%46, %c0_34, %c0_35] : memref<8x8x128xf32, #tpu.memory_space<vmem>>, vector<1x8x128xf32>
    %48 = vector.shape_cast %47 : vector<1x8x128xf32> to vector<8x128xf32>
    %c0_36 = arith.constant 0 : index
    %c0_37 = arith.constant 0 : index
    %49 = vector.load %arg4[%c0_36, %c0_37] : memref<128x128xf32, #tpu.memory_space<vmem>>, vector<128x128xf32>
    %cst_38 = arith.constant dense<0.000000e+00> : vector<8x128xf32>
    %50 = tpu.matmul %41, %49, %cst_38 {dimension_numbers = #tpu.dot_dimension_numbers<[1], [0], [0], [1], [0, 0, 1, 1], [], []>} : vector<8x128xf32>, vector<128x128xf32>, vector<8x128xf32> -> vector<8x128xf32>
    %51 = arith.addf %48, %50 : vector<8x128xf32>
    %52 = math.tanh %51 : vector<8x128xf32>
    %53 = arith.index_cast %c3_i32 : i32 to index
    %c0_39 = arith.constant 0 : index
    %c0_40 = arith.constant 0 : index
    %54 = vector.load %arg11[%53, %c0_39, %c0_40] : memref<8x8x128xf32, #tpu.memory_space<vmem>>, vector<1x8x128xf32>
    %55 = vector.shape_cast %54 : vector<1x8x128xf32> to vector<8x128xf32>
    %56 = vector.shape_cast %52 : vector<8x128xf32> to vector<1x8x128xf32>
    tpu.vector_store %arg11[%53, %c0_39, %c0_40], %56 {strides = array<i32>} : memref<8x8x128xf32, #tpu.memory_space<vmem>>, vector<1x8x128xf32>,
    %c4_i32 = arith.constant 4 : i32
    %57 = arith.index_cast %c4_i32 : i32 to index
    %c0_41 = arith.constant 0 : index
    %c0_42 = arith.constant 0 : index
    %58 = vector.load %arg11[%57, %c0_41, %c0_42] : memref<8x8x128xf32, #tpu.memory_space<vmem>>, vector<1x8x128xf32>
    %59 = vector.shape_cast %58 : vector<1x8x128xf32> to vector<8x128xf32>
    %c0_43 = arith.constant 0 : index
    %c0_44 = arith.constant 0 : index
    %60 = vector.load %arg4[%c0_43, %c0_44] : memref<128x128xf32, #tpu.memory_space<vmem>>, vector<128x128xf32>
    %cst_45 = arith.constant dense<0.000000e+00> : vector<8x128xf32>
    %61 = tpu.matmul %52, %60, %cst_45 {dimension_numbers = #tpu.dot_dimension_numbers<[1], [0], [0], [1], [0, 0, 1, 1], [], []>} : vector<8x128xf32>, vector<128x128xf32>, vector<8x128xf32> -> vector<8x128xf32>
    %62 = arith.addf %59, %61 : vector<8x128xf32>
    %63 = math.tanh %62 : vector<8x128xf32>
    %64 = arith.index_cast %c4_i32 : i32 to index
    %c0_46 = arith.constant 0 : index
    %c0_47 = arith.constant 0 : index
    %65 = vector.load %arg11[%64, %c0_46, %c0_47] : memref<8x8x128xf32, #tpu.memory_space<vmem>>, vector<1x8x128xf32>
    %66 = vector.shape_cast %65 : vector<1x8x128xf32> to vector<8x128xf32>
    %67 = vector.shape_cast %63 : vector<8x128xf32> to vector<1x8x128xf32>
    tpu.vector_store %arg11[%64, %c0_46, %c0_47], %67 {strides = array<i32>} : memref<8x8x128xf32, #tpu.memory_space<vmem>>, vector<1x8x128xf32>,
    %c5_i32 = arith.constant 5 : i32
    %68 = arith.index_cast %c5_i32 : i32 to index
    %c0_48 = arith.constant 0 : index
    %c0_49 = arith.constant 0 : index
    %69 = vector.load %arg11[%68, %c0_48, %c0_49] : memref<8x8x128xf32, #tpu.memory_space<vmem>>, vector<1x8x128xf32>
    %70 = vector.shape_cast %69 : vector<1x8x128xf32> to vector<8x128xf32>
    %c0_50 = arith.constant 0 : index
    %c0_51 = arith.constant 0 : index
    %71 = vector.load %arg4[%c0_50, %c0_51] : memref<128x128xf32, #tpu.memory_space<vmem>>, vector<128x128xf32>
    %cst_52 = arith.constant dense<0.000000e+00> : vector<8x128xf32>
    %72 = tpu.matmul %63, %71, %cst_52 {dimension_numbers = #tpu.dot_dimension_numbers<[1], [0], [0], [1], [0, 0, 1, 1], [], []>} : vector<8x128xf32>, vector<128x128xf32>, vector<8x128xf32> -> vector<8x128xf32>
    %73 = arith.addf %70, %72 : vector<8x128xf32>
    %74 = math.tanh %73 : vector<8x128xf32>
    %75 = arith.index_cast %c5_i32 : i32 to index
    %c0_53 = arith.constant 0 : index
    %c0_54 = arith.constant 0 : index
    %76 = vector.load %arg11[%75, %c0_53, %c0_54] : memref<8x8x128xf32, #tpu.memory_space<vmem>>, vector<1x8x128xf32>
    %77 = vector.shape_cast %76 : vector<1x8x128xf32> to vector<8x128xf32>
    %78 = vector.shape_cast %74 : vector<8x128xf32> to vector<1x8x128xf32>
    tpu.vector_store %arg11[%75, %c0_53, %c0_54], %78 {strides = array<i32>} : memref<8x8x128xf32, #tpu.memory_space<vmem>>, vector<1x8x128xf32>,
    %c6_i32 = arith.constant 6 : i32
    %79 = arith.index_cast %c6_i32 : i32 to index
    %c0_55 = arith.constant 0 : index
    %c0_56 = arith.constant 0 : index
    %80 = vector.load %arg11[%79, %c0_55, %c0_56] : memref<8x8x128xf32, #tpu.memory_space<vmem>>, vector<1x8x128xf32>
    %81 = vector.shape_cast %80 : vector<1x8x128xf32> to vector<8x128xf32>
    %c0_57 = arith.constant 0 : index
    %c0_58 = arith.constant 0 : index
    %82 = vector.load %arg4[%c0_57, %c0_58] : memref<128x128xf32, #tpu.memory_space<vmem>>, vector<128x128xf32>
    %cst_59 = arith.constant dense<0.000000e+00> : vector<8x128xf32>
    %83 = tpu.matmul %74, %82, %cst_59 {dimension_numbers = #tpu.dot_dimension_numbers<[1], [0], [0], [1], [0, 0, 1, 1], [], []>} : vector<8x128xf32>, vector<128x128xf32>, vector<8x128xf32> -> vector<8x128xf32>
    %84 = arith.addf %81, %83 : vector<8x128xf32>
    %85 = math.tanh %84 : vector<8x128xf32>
    %86 = arith.index_cast %c6_i32 : i32 to index
    %c0_60 = arith.constant 0 : index
    %c0_61 = arith.constant 0 : index
    %87 = vector.load %arg11[%86, %c0_60, %c0_61] : memref<8x8x128xf32, #tpu.memory_space<vmem>>, vector<1x8x128xf32>
    %88 = vector.shape_cast %87 : vector<1x8x128xf32> to vector<8x128xf32>
    %89 = vector.shape_cast %85 : vector<8x128xf32> to vector<1x8x128xf32>
    tpu.vector_store %arg11[%86, %c0_60, %c0_61], %89 {strides = array<i32>} : memref<8x8x128xf32, #tpu.memory_space<vmem>>, vector<1x8x128xf32>,
    %c7_i32 = arith.constant 7 : i32
    %90 = arith.index_cast %c7_i32 : i32 to index
    %c0_62 = arith.constant 0 : index
    %c0_63 = arith.constant 0 : index
    %91 = vector.load %arg11[%90, %c0_62, %c0_63] : memref<8x8x128xf32, #tpu.memory_space<vmem>>, vector<1x8x128xf32>
    %92 = vector.shape_cast %91 : vector<1x8x128xf32> to vector<8x128xf32>
    %c0_64 = arith.constant 0 : index
    %c0_65 = arith.constant 0 : index
    %93 = vector.load %arg4[%c0_64, %c0_65] : memref<128x128xf32, #tpu.memory_space<vmem>>, vector<128x128xf32>
    %cst_66 = arith.constant dense<0.000000e+00> : vector<8x128xf32>
    %94 = tpu.matmul %85, %93, %cst_66 {dimension_numbers = #tpu.dot_dimension_numbers<[1], [0], [0], [1], [0, 0, 1, 1], [], []>} : vector<8x128xf32>, vector<128x128xf32>, vector<8x128xf32> -> vector<8x128xf32>
    %95 = arith.addf %92, %94 : vector<8x128xf32>
    %96 = math.tanh %95 : vector<8x128xf32>
    %97 = arith.index_cast %c7_i32 : i32 to index
    %c0_67 = arith.constant 0 : index
    %c0_68 = arith.constant 0 : index
    %98 = vector.load %arg11[%97, %c0_67, %c0_68] : memref<8x8x128xf32, #tpu.memory_space<vmem>>, vector<1x8x128xf32>
    %99 = vector.shape_cast %98 : vector<1x8x128xf32> to vector<8x128xf32>
    %100 = vector.shape_cast %96 : vector<8x128xf32> to vector<1x8x128xf32>
    tpu.vector_store %arg11[%97, %c0_67, %c0_68], %100 {strides = array<i32>} : memref<8x8x128xf32, #tpu.memory_space<vmem>>, vector<1x8x128xf32>,
    %c8_i32 = arith.constant 8 : i32
    %c0_69 = arith.constant 0 : index
    %c0_70 = arith.constant 0 : index
    %101 = vector.load %arg10[%c0_69, %c0_70] : memref<8x128xf32, #tpu.memory_space<vmem>>, vector<8x128xf32>
    tpu.vector_store %arg10[%c0_69, %c0_70], %96 {strides = array<i32>} : memref<8x128xf32, #tpu.memory_space<vmem>>, vector<8x128xf32>,
    %c0_i32_71 = arith.constant 0 : i32
    %102 = arith.cmpi eq, %arg1, %c0_i32_71 : i32
    %103 = arith.extui %102 : i1 to i32
    %c0_i32_72 = arith.constant 0 : i32
    %104 = arith.cmpi ne, %103, %c0_i32_72 : i32
    scf.if %104 {
      %c0_84 = arith.constant 0 : index
      %c0_85 = arith.constant 0 : index
      %114 = vector.load %arg10[%c0_84, %c0_85] : memref<8x128xf32, #tpu.memory_space<vmem>>, vector<8x128xf32>
      %c0_86 = arith.constant 0 : index
      %c0_87 = arith.constant 0 : index
      %115 = vector.load %arg9[%c0_86, %c0_87] : memref<8x128xf32, #tpu.memory_space<vmem>>, vector<8x128xf32>
      tpu.vector_store %arg9[%c0_86, %c0_87], %114 {strides = array<i32>} : memref<8x128xf32, #tpu.memory_space<vmem>>, vector<8x128xf32>,
    } else {
    }
    %c0_73 = arith.constant 0 : index
    %c0_74 = arith.constant 0 : index
    %c0_75 = arith.constant 0 : index
    %105 = vector.load %arg11[%c0_73, %c0_74, %c0_75] : memref<8x8x128xf32, #tpu.memory_space<vmem>>, vector<8x8x128xf32>
    %106 = vector.shape_cast %105 : vector<8x8x128xf32> to vector<64x128xf32>
    %c0_76 = arith.constant 0 : index
    %c0_77 = arith.constant 0 : index
    %107 = vector.load %arg5[%c0_76, %c0_77] : memref<128x128xf32, #tpu.memory_space<vmem>>, vector<128x128xf32>
    %cst_78 = arith.constant dense<0.000000e+00> : vector<64x128xf32>
    %108 = tpu.matmul %106, %107, %cst_78 {dimension_numbers = #tpu.dot_dimension_numbers<[1], [0], [0], [1], [0, 0, 1, 1], [], []>} : vector<64x128xf32>, vector<128x128xf32>, vector<64x128xf32> -> vector<64x128xf32>
    %c0_79 = arith.constant 0 : index
    %c0_80 = arith.constant 0 : index
    %109 = vector.load %arg7[%c0_79, %c0_80] : memref<1x128xf32, #tpu.memory_space<vmem>>, vector<1x128xf32>
    %110 = vector.broadcast %109 : vector<1x128xf32> to vector<64x128xf32>
    %111 = arith.addf %108, %110 : vector<64x128xf32>
    %112 = vector.shape_cast %111 : vector<64x128xf32> to vector<8x8x128xf32>
    %c0_81 = arith.constant 0 : index
    %c0_82 = arith.constant 0 : index
    %c0_83 = arith.constant 0 : index
    %113 = vector.load %arg8[%c0_81, %c0_82, %c0_83] : memref<8x8x128xf32, #tpu.memory_space<vmem>>, vector<8x8x128xf32>
    tpu.vector_store %arg8[%c0_81, %c0_82, %c0_83], %112 {strides = array<i32>} : memref<8x8x128xf32, #tpu.memory_space<vmem>>, vector<8x8x128xf32>,
    return
  }
  func.func @transform_0(%arg0: i32, %arg1: i32) -> (i32, i32, i32) {
    %c0_i32 = arith.constant 0 : i32
    %c0_i32_0 = arith.constant 0 : i32
    return %arg1, %arg0, %c0_i32 : i32, i32, i32
  }
  func.func @transform_1(%arg0: i32, %arg1: i32) -> (i32, i32) {
    %c0_i32 = arith.constant 0 : i32
    %c0_i32_0 = arith.constant 0 : i32
    %c0_i32_1 = arith.constant 0 : i32
    return %c0_i32, %c0_i32_0 : i32, i32
  }
  func.func @transform_2(%arg0: i32, %arg1: i32) -> (i32, i32) {
    %c0_i32 = arith.constant 0 : i32
    %c0_i32_0 = arith.constant 0 : i32
    %c0_i32_1 = arith.constant 0 : i32
    return %c0_i32, %c0_i32_0 : i32, i32
  }
  func.func @transform_3(%arg0: i32, %arg1: i32) -> (i32, i32) {
    %c0_i32 = arith.constant 0 : i32
    %c0_i32_0 = arith.constant 0 : i32
    %c0_i32_1 = arith.constant 0 : i32
    return %c0_i32, %c0_i32_0 : i32, i32
  }
  func.func @transform_4(%arg0: i32, %arg1: i32) -> (i32, i32) {
    %c0_i32 = arith.constant 0 : i32
    %c0_i32_0 = arith.constant 0 : i32
    %c0_i32_1 = arith.constant 0 : i32
    return %c0_i32, %c0_i32_0 : i32, i32
  }
  func.func @transform_5(%arg0: i32, %arg1: i32) -> (i32, i32) {
    %c0_i32 = arith.constant 0 : i32
    %c0_i32_0 = arith.constant 0 : i32
    %c0_i32_1 = arith.constant 0 : i32
    return %c0_i32, %c0_i32_0 : i32, i32
  }
  func.func @transform_6(%arg0: i32, %arg1: i32) -> (i32, i32, i32) {
    %c0_i32 = arith.constant 0 : i32
    %c0_i32_0 = arith.constant 0 : i32
    return %arg1, %arg0, %c0_i32 : i32, i32, i32
  }
  func.func @transform_7(%arg0: i32, %arg1: i32) -> (i32, i32) {
    %c0_i32 = arith.constant 0 : i32
    %c0_i32_0 = arith.constant 0 : i32
    return %arg0, %c0_i32 : i32, i32
  }
}

</mosaic_0001>

<bundles_post_ra>
// kernel: tpu_custom_call.1
= control target key start
LH: loop header
LB: loop body
LE: loop exit
PB: predicated region body
PF: predicated region fallthrough
CT: control target
= control target key end

     0   :  { %13 = vsyncpa [#allocation5], 0  ;;  %s2291_s0 = inlined_call_operand.hbm [shape: f32[8,8,128], index: 0, kind: input, shape index: {}]   ;;  %s2292_s1 = inlined_call_operand.hbm [shape: f32[128,128], index: 1, kind: input, shape index: {}]   ;;  %s2293_s2 = inlined_call_operand.hbm [shape: f32[128,128], index: 2, kind: input, shape index: {}]   ;;  %s2294_s3 = inlined_call_operand.hbm [shape: f32[128,128], index: 3, kind: input, shape index: {}]   ;;  %s2295_s4 = inlined_call_operand.vmem [shape: f32[1,128], index: 4, kind: input, shape index: {}]   ;;  %s2296_s5 = inlined_call_operand.vmem [shape: f32[1,128], index: 5, kind: input, shape index: {}]   ;;  %s2297_s6 = inlined_call_operand.hbm [shape: f32[8,8,128], index: 6, kind: output, shape index: {0}]   ;;  %s2298_s7 = inlined_call_operand.hbm [shape: f32[8,128], index: 7, kind: output, shape index: {1}]  }
   0x1   :  { %14 = vsyncpa [#allocation8], 0 }
   0x2   :  { %15 = vsyncpa [#allocation11], 0 }
   0x3   :  { %16 = vsyncpa [#allocation6], 0 }
   0x4   :  { %17 = vsyncpa [#allocation14], 0  ;;  %s1852_s24 = smov [#allocation7]   ;;  %s1853_s26 = smov [#allocation4]  }
   0x5   :  { %s35_s25 = sshll.u32 %s1852_s24, 4  ;;  %s23_s27 = sshll.u32 %s1853_s26, 4  ;;  %s36_s25 = int_to_ptr.vmem [resolvable:$true] %s35_s25  ;;  %s24_s27 = int_to_ptr.vmem [resolvable:$true] %s23_s27 }
   0x6   :  { %s1730_s28 = scalar_lea.vmem %s36_s25, 2048  ;;  %p1735_p1 = scmp.lt.s32.totalorder %s36_s25, %s36_s25 }
   0x7   :  { %p1731_p0 = scmp.ne.s32.totalorder %s36_s25, %s1730_s28  ;;  %p1736_p2 = scmp.lt.s32.totalorder %s1730_s28, %s1730_s28 }
   0x9   :  { %p1737_p3 = por %p1736_p2, %p1735_p1 }
   0xb   :  { %p1738_p4 = pnand %p1737_p3, %p1731_p0 }
   0xd   :  { %1741 = shalt.err (!%p1738_p4)
}
   0xe   :  { %s1854_s29 = smov 128   ;;  %s1855_s30 = smov 8  }
   0xf   :  { %41 = dma.hbm_to_vmem [thread:$0]  %s2292_s1, 2048, %s36_s25, [#allocation8], %s1854_s29, %s1854_s29, %s1855_s30  }
  0x10   :  { %s1750_s10 = scalar_lea.vmem %s24_s27, 1024  ;;  %p1755_p6 = scmp.lt.s32.totalorder %s24_s27, %s24_s27 }
  0x11   :  { %p1751_p5 = scmp.ne.s32.totalorder %s24_s27, %s1750_s10  ;;  %p1756_p7 = scmp.lt.s32.totalorder %s1750_s10, %s1750_s10 }
  0x13   :  { %p1757_p8 = por %p1756_p7, %p1755_p6 }
  0x15   :  { %p1758_p9 = pnand %p1757_p8, %p1751_p5 }
  0x17   :  { %1761 = shalt.err (!%p1758_p9)
}
  0x18   :  { %29 = dma.hbm_to_vmem [thread:$0]  %s2291_s0, 1024, %s24_s27, [#allocation5], %s1854_s29, %s1854_s29, %s1855_s30  }
  0x19   :  { %s1856_s13 = smov [#allocation9]   ;;  %s1857_s15 = smov [#allocation10]  }
  0x1a   :  { %s47_s14 = sshll.u32 %s1856_s13, 4  ;;  %s59_s16 = sshll.u32 %s1857_s15, 4  ;;  %s48_s14 = int_to_ptr.vmem [resolvable:$true] %s47_s14  ;;  %s60_s16 = int_to_ptr.vmem [resolvable:$true] %s59_s16 }
  0x1b   :  { %s1770_s1 = scalar_lea.vmem %s48_s14, 2048  ;;  %p1775_p11 = scmp.lt.s32.totalorder %s48_s14, %s48_s14 }
  0x1c   :  { %p1771_p10 = scmp.ne.s32.totalorder %s48_s14, %s1770_s1  ;;  %p1776_p12 = scmp.lt.s32.totalorder %s1770_s1, %s1770_s1 }
  0x1e   :  { %p1777_p13 = por %p1776_p12, %p1775_p11 }
  0x20   :  { %p1778_p0 = pnand %p1777_p13, %p1771_p10 }
  0x22   :  { %1781 = shalt.err (!%p1778_p0)
}
  0x23   :  { %53 = dma.hbm_to_vmem [thread:$0]  %s2293_s2, 2048, %s48_s14, [#allocation8], %s1854_s29, %s1854_s29, %s1855_s30  }
  0x24   :  { %s1790_s0 = scalar_lea.vmem %s60_s16, 2048  ;;  %p1795_p2 = scmp.lt.s32.totalorder %s60_s16, %s60_s16 }
  0x25   :  { %p1791_p1 = scmp.ne.s32.totalorder %s60_s16, %s1790_s0  ;;  %p1796_p3 = scmp.lt.s32.totalorder %s1790_s0, %s1790_s0 }
  0x27   :  { %p1797_p4 = por %p1796_p3, %p1795_p2 }
  0x29   :  { %p1798_p5 = pnand %p1797_p4, %p1791_p1 }
  0x2b   :  { %1801 = shalt.err (!%p1798_p5)
}
  0x2c   :  { %65 = dma.hbm_to_vmem [thread:$0]  %s2294_s3, 2048, %s60_s16, [#allocation11], %s1854_s29, %s1854_s29, %s1855_s30  }
  0x2d   :  { %1842 = dma.done.wait [#allocation5], 1024  }
  0x2e   :  { %1843 = vsyncadd [#allocation5], 4294966272 }
  0x2f   :  { %1844 = dma.done.wait [#allocation8], 4096  }
  0x30   :  { %1845 = vsyncadd [#allocation8], 4294963200 }
  0x31   :  { %1846 = dma.done.wait [#allocation11], 2048  }
  0x32   :  { %1847 = vsyncadd [#allocation11], 4294965248  ;;  %v1858_v0 = vmov 0.0   ;;  %vm1859_vm0 = vmmov 0   ;;  %v110_v1 = vld [vmem:[#allocation7 + $0x78] sm:$0xff]  ;;  %v109_v2 = vld [vmem:[#allocation7 + $0x70] sm:$0xff] }
  0x33   :  { %1372 = vmatprep.subr.mxu1 %v1858_v0  ;;  %1404 = vmatprep.mubr.msk.f32.mxu1 %vm1859_vm0, %v1858_v0  ;;  %v1929_v3 = vld [vmem:[#allocation9 + $0x78] sm:$0xff]  ;;  %v1932_v4 = vld [vmem:[#allocation9 + $0x70] sm:$0xff]  ;;  %v108_v5 = vld [vmem:[#allocation7 + $0x68] sm:$0xff] }
  0x34   :  { %1328 = vmatprep.subr.mxu0 %v110_v1  ;;  %1373 = vmatpush3.msra.mxu1 %v1929_v3  ;;  %v1935_v6 = vld [vmem:[#allocation9 + $0x68] sm:$0xff]  ;;  %v107_v7 = vld [vmem:[#allocation7 + $0x60] sm:$0xff]  ;;  %v106_v9 = vld [vmem:[#allocation7 + $0x58] sm:$0xff] }
  0x35   :  { %1329 = vmatpush3.msra.mxu0 %v110_v1  ;;  %1374 = vmatprep.subr.mxu1 %v1858_v0  ;;  %v1939_v8 = vld [vmem:[#allocation9 + $0x60] sm:$0xff]  ;;  %v1943_v10 = vld [vmem:[#allocation9 + $0x58] sm:$0xff]  ;;  %v105_v11 = vld [vmem:[#allocation7 + $0x50] sm:$0xff] }
  0x36   :  { %1330 = vmatprep.subr.mxu0 %v109_v2  ;;  %1375 = vmatpush3.msra.mxu1 %v1932_v4  ;;  %v1947_v12 = vld [vmem:[#allocation9 + $0x50] sm:$0xff]  ;;  %v104_v13 = vld [vmem:[#allocation7 + $0x48] sm:$0xff]  ;;  %v103_v15 = vld [vmem:[#allocation7 + $0x40] sm:$0xff] }
  0x37   :  { %1331 = vmatpush3.msra.mxu0 %v109_v2  ;;  %1376 = vmatprep.subr.mxu1 %v1858_v0  ;;  %v1951_v14 = vld [vmem:[#allocation9 + $0x48] sm:$0xff]  ;;  %v1955_v16 = vld [vmem:[#allocation9 + $0x40] sm:$0xff]  ;;  %v102_v17 = vld [vmem:[#allocation7 + $0x38] sm:$0xff] }
  0x38   :  { %1332 = vmatprep.subr.mxu0 %v108_v5  ;;  %1377 = vmatpush3.msra.mxu1 %v1935_v6  ;;  %v1959_v18 = vld [vmem:[#allocation9 + $0x38] sm:$0xff]  ;;  %v101_v19 = vld [vmem:[#allocation7 + $0x30] sm:$0xff]  ;;  %v100_v21 = vld [vmem:[#allocation7 + $0x28] sm:$0xff] }
  0x39   :  { %1333 = vmatpush3.msra.mxu0 %v108_v5  ;;  %1378 = vmatprep.subr.mxu1 %v1858_v0  ;;  %v1963_v20 = vld [vmem:[#allocation9 + $0x30] sm:$0xff]  ;;  %v1967_v22 = vld [vmem:[#allocation9 + $0x28] sm:$0xff]  ;;  %v99_v23 = vld [vmem:[#allocation7 + $0x20] sm:$0xff] }
  0x3a   :  { %1334 = vmatprep.subr.mxu0 %v107_v7  ;;  %1379 = vmatpush3.msra.mxu1 %v1939_v8  ;;  %v1971_v24 = vld [vmem:[#allocation9 + $0x20] sm:$0xff]  ;;  %v98_v25 = vld [vmem:[#allocation7 + $0x18] sm:$0xff]  ;;  %v97_v27 = vld [vmem:[#allocation7 + $0x10] sm:$0xff] }
  0x3b   :  { %1335 = vmatpush3.msra.mxu0 %v107_v7  ;;  %1380 = vmatprep.subr.mxu1 %v1858_v0  ;;  %v1975_v26 = vld [vmem:[#allocation9 + $0x18] sm:$0xff]  ;;  %v1979_v28 = vld [vmem:[#allocation9 + $0x10] sm:$0xff]  ;;  %v96_v29 = vld [vmem:[#allocation7 + $0x8] sm:$0xff] }
  0x3c   :  { %1336 = vmatprep.subr.mxu0 %v106_v9  ;;  %1381 = vmatpush3.msra.mxu1 %v1943_v10  ;;  %v87_v30 = vld [vmem:[#allocation4] sm:$0xff]  ;;  %v1984_v31 = vld [vmem:[#allocation9 + $0x8] sm:$0xff]  ;;  %v89_v35 = vld [vmem:[#allocation4 + $0x10] sm:$0xff] }
  0x3d   :  { %1337 = vmatpush3.msra.mxu0 %v106_v9  ;;  %1382 = vmatprep.subr.mxu1 %v1858_v0  ;;  %v95_v32 = vld [vmem:[#allocation7] sm:$0xff]  ;;  %v88_v34 = vld [vmem:[#allocation4 + $0x8] sm:$0xff]  ;;  %v90_v36 = vld [vmem:[#allocation4 + $0x18] sm:$0xff] }
  0x3e   :  { %1338 = vmatprep.subr.mxu0 %v105_v11  ;;  %1383 = vmatpush3.msra.mxu1 %v1947_v12  ;;  %v1987_v33 = vld [vmem:[#allocation9] sm:$0xff]  ;;  %v92_v38 = vld [vmem:[#allocation4 + $0x28] sm:$0xff]  ;;  %v93_v39 = vld [vmem:[#allocation4 + $0x30] sm:$0xff] }
  0x3f   :  { %1339 = vmatpush3.msra.mxu0 %v105_v11  ;;  %1384 = vmatprep.subr.mxu1 %v1858_v0  ;;  %v91_v37 = vld [vmem:[#allocation4 + $0x20] sm:$0xff]  ;;  %v94_v40 = vld [vmem:[#allocation4 + $0x38] sm:$0xff] }
  0x40   :  { %1340 = vmatprep.subr.mxu0 %v104_v13  ;;  %1385 = vmatpush3.msra.mxu1 %v1951_v14  ;;  %v2066_v43 = vld [vmem:[%s2295_s4] ss:$0 sm:$0xff] }
  0x41   :  { %1341 = vmatpush3.msra.mxu0 %v104_v13  ;;  %1386 = vmatprep.subr.mxu1 %v1858_v0 }
  0x42   :  { %1342 = vmatprep.subr.mxu0 %v103_v15  ;;  %1387 = vmatpush3.msra.mxu1 %v1955_v16 }
  0x43   :  { %1343 = vmatpush3.msra.mxu0 %v103_v15  ;;  %1388 = vmatprep.subr.mxu1 %v1858_v0 }
  0x44   :  { %1344 = vmatprep.subr.mxu0 %v102_v17  ;;  %1389 = vmatpush3.msra.mxu1 %v1959_v18 }
  0x45   :  { %1345 = vmatpush3.msra.mxu0 %v102_v17  ;;  %1390 = vmatprep.subr.mxu1 %v1858_v0 }
  0x46   :  { %1346 = vmatprep.subr.mxu0 %v101_v19  ;;  %1391 = vmatpush3.msra.mxu1 %v1963_v20 }
  0x47   :  { %1347 = vmatpush3.msra.mxu0 %v101_v19  ;;  %1392 = vmatprep.subr.mxu1 %v1858_v0 }
  0x48   :  { %1348 = vmatprep.subr.mxu0 %v100_v21  ;;  %1393 = vmatpush3.msra.mxu1 %v1967_v22 }
  0x49   :  { %1349 = vmatpush3.msra.mxu0 %v100_v21  ;;  %1394 = vmatprep.subr.mxu1 %v1858_v0 }
  0x4a   :  { %1350 = vmatprep.subr.mxu0 %v99_v23  ;;  %1395 = vmatpush3.msra.mxu1 %v1971_v24 }
  0x4b   :  { %1351 = vmatpush3.msra.mxu0 %v99_v23  ;;  %1396 = vmatprep.subr.mxu1 %v1858_v0  ;;  %v981_v23 = vld [vmem:[#allocation10 + $0x40] sm:$0xff] }
  0x4c   :  { %1352 = vmatprep.subr.mxu0 %v98_v25  ;;  %1397 = vmatpush3.msra.mxu1 %v1975_v26 }
  0x4d   :  { %1353 = vmatpush3.msra.mxu0 %v98_v25  ;;  %1398 = vmatprep.subr.mxu1 %v1858_v0  ;;  %v979_v25 = vld [vmem:[#allocation10 + $0x30] sm:$0xff] }
  0x4e   :  { %1354 = vmatprep.subr.mxu0 %v97_v27  ;;  %1399 = vmatpush3.msra.mxu1 %v1979_v28 }
  0x4f   :  { %1355 = vmatpush3.msra.mxu0 %v97_v27  ;;  %1400 = vmatprep.subr.mxu1 %v1858_v0  ;;  %v977_v27 = vld [vmem:[#allocation10 + $0x20] sm:$0xff] }
  0x50   :  { %1356 = vmatprep.subr.mxu0 %v96_v29  ;;  %1360 = vmatprep.mubr.f32.mxu0 %v87_v30  ;;  %v974_v30 = vld [vmem:[#allocation10 + $0x8] sm:$0xff] }
  0x51   :  { %1357 = vmatpush3.msra.mxu0 %v96_v29  ;;  %1401 = vmatpush3.msra.mxu1 %v1984_v31  ;;  %v975_v29 = vld [vmem:[#allocation10 + $0x10] sm:$0xff] }
  0x52   :  { %1358 = vmatprep.subr.mxu0 %v95_v32  ;;  %1402 = vmatprep.subr.mxu1 %v1858_v0 }
  0x53   :  { %1359 = vmatpush3.msra.mxu0 %v95_v32  ;;  %1403 = vmatpush3.msra.mxu1 %v1987_v33 }
  0x54   :  { %1361 = vmatmul.mubr.f32.vlgmr.msra.gmra.mxu0 %v88_v34  ;;  %1405 = vmatmul.mubr.f32.vlgmr.msra.gmra.mxu1 %v1858_v0 }
  0x55   :  { %1407 = vmatprep.subr.mxu0 %v1858_v0  ;;  %1442 = vmatprep.subr.mxu1 %v1858_v0 }
  0x56   :  { %1408 = vmatpush3.msra.mxu0 %v1929_v3  ;;  %1443 = vmatpush3.msra.mxu1 %v1929_v3 }
  0x57   :  { %1409 = vmatprep.subr.mxu0 %v1858_v0  ;;  %1444 = vmatprep.subr.mxu1 %v1858_v0 }
  0x58   :  { %1410 = vmatpush3.msra.mxu0 %v1932_v4  ;;  %1445 = vmatpush3.msra.mxu1 %v1932_v4 }
  0x59   :  { %1411 = vmatprep.subr.mxu0 %v1858_v0  ;;  %1446 = vmatprep.subr.mxu1 %v1858_v0 }
  0x5a   :  { %1412 = vmatpush3.msra.mxu0 %v1935_v6  ;;  %1447 = vmatpush3.msra.mxu1 %v1935_v6 }
  0x5b   :  { %1413 = vmatprep.subr.mxu0 %v1858_v0  ;;  %1448 = vmatprep.subr.mxu1 %v1858_v0 }
  0x5c   :  { %1414 = vmatpush3.msra.mxu0 %v1939_v8  ;;  %1449 = vmatpush3.msra.mxu1 %v1939_v8 }
  0x5d   :  { %1415 = vmatprep.subr.mxu0 %v1858_v0  ;;  %1450 = vmatprep.subr.mxu1 %v1858_v0 }
  0x5e   :  { %1416 = vmatpush3.msra.mxu0 %v1943_v10  ;;  %1451 = vmatpush3.msra.mxu1 %v1943_v10 }
  0x5f   :  { %1417 = vmatprep.subr.mxu0 %v1858_v0  ;;  %1452 = vmatprep.subr.mxu1 %v1858_v0 }
  0x60   :  { %1418 = vmatpush3.msra.mxu0 %v1947_v12  ;;  %1453 = vmatpush3.msra.mxu1 %v1947_v12 }
  0x61   :  { %1419 = vmatprep.subr.mxu0 %v1858_v0  ;;  %1454 = vmatprep.subr.mxu1 %v1858_v0 }
  0x62   :  { %1420 = vmatpush3.msra.mxu0 %v1951_v14  ;;  %1455 = vmatpush3.msra.mxu1 %v1951_v14 }
  0x63   :  { %1421 = vmatprep.subr.mxu0 %v1858_v0  ;;  %1456 = vmatprep.subr.mxu1 %v1858_v0 }
  0x64   :  { %1422 = vmatpush3.msra.mxu0 %v1955_v16  ;;  %1457 = vmatpush3.msra.mxu1 %v1955_v16 }
  0x65   :  { %1423 = vmatprep.subr.mxu0 %v1858_v0  ;;  %1458 = vmatprep.subr.mxu1 %v1858_v0 }
  0x66   :  { %1424 = vmatpush3.msra.mxu0 %v1959_v18  ;;  %1459 = vmatpush3.msra.mxu1 %v1959_v18 }
  0x67   :  { %1425 = vmatprep.subr.mxu0 %v1858_v0  ;;  %1460 = vmatprep.subr.mxu1 %v1858_v0 }
  0x68   :  { %1426 = vmatpush3.msra.mxu0 %v1963_v20  ;;  %1461 = vmatpush3.msra.mxu1 %v1963_v20 }
  0x69   :  { %1427 = vmatprep.subr.mxu0 %v1858_v0  ;;  %1462 = vmatprep.subr.mxu1 %v1858_v0 }
  0x6a   :  { %1428 = vmatpush3.msra.mxu0 %v1967_v22  ;;  %1463 = vmatpush3.msra.mxu1 %v1967_v22 }
  0x6b   :  { %1429 = vmatprep.subr.mxu0 %v1858_v0  ;;  %1464 = vmatprep.subr.mxu1 %v1858_v0 }
  0x6c   :  { %1430 = vmatpush3.msra.mxu0 %v1971_v24  ;;  %1465 = vmatpush3.msra.mxu1 %v1971_v24 }
  0x6d   :  { %1431 = vmatprep.subr.mxu0 %v1858_v0  ;;  %1466 = vmatprep.subr.mxu1 %v1858_v0 }
  0x6e   :  { %1432 = vmatpush3.msra.mxu0 %v1975_v26  ;;  %1467 = vmatpush3.msra.mxu1 %v1975_v26 }
  0x6f   :  { %1433 = vmatprep.subr.mxu0 %v1858_v0  ;;  %1468 = vmatprep.subr.mxu1 %v1858_v0 }
  0x70   :  { %1434 = vmatpush3.msra.mxu0 %v1979_v28  ;;  %1469 = vmatpush3.msra.mxu1 %v1979_v28 }
  0x71   :  { %1435 = vmatprep.subr.mxu0 %v1858_v0  ;;  %1470 = vmatprep.subr.mxu1 %v1858_v0 }
  0x72   :  { %1436 = vmatpush3.msra.mxu0 %v1984_v31  ;;  %1471 = vmatpush3.msra.mxu1 %v1984_v31 }
  0x73   :  { %1437 = vmatprep.subr.mxu0 %v1858_v0  ;;  %1472 = vmatprep.subr.mxu1 %v1858_v0 }
  0x74   :  { %1438 = vmatpush3.msra.mxu0 %v1987_v33  ;;  %1473 = vmatpush3.msra.mxu1 %v1987_v33 }
  0x75   :  { %1474 = vmatprep.mubr.msk.f32.mxu1 %vm1859_vm0, %v1858_v0  ;;  %1477 = vmatprep.subr.mxu0 %v1858_v0 }
  0x76   :  { %1512 = vmatprep.subr.mxu1 %v1858_v0  ;;  %1363 = vmatprep.mubr.f32.mxu0 %v89_v35 }
  0x77   :  { %1364 = vmatmul.mubr.f32.gmra.mxu0 %v90_v36 }
  0x78   :  { %1366 = vmatprep.mubr.f32.mxu0 %v91_v37  ;;  %v1143_v37 = vld [vmem:[%s2296_s5] ss:$0 sm:$0xff]  ;;  %s1860_s5 = smov [#allocation13]  }
  0x79   :  { %s1127_s22 = sshll.u32 %s1860_s5, 4  ;;  %s1128_s22 = int_to_ptr.vmem [resolvable:$true] %s1127_s22 }
  0x7a   :  { %s1802_s23 = scalar_lea.vmem %s1128_s22, 128  ;;  %p1807_p7 = scmp.lt.s32.totalorder %s1128_s22, %s1128_s22 }
  0x7b   :  { %1367 = vmatmul.mubr.f32.gmra.mxu0 %v92_v38  ;;  %p1803_p6 = scmp.ne.s32.totalorder %s1128_s22, %s1802_s23  ;;  %p1808_p8 = scmp.lt.s32.totalorder %s1802_s23, %s1802_s23 }
  0x7c   :  { %1369 = vmatprep.mubr.f32.mxu0 %v93_v39 }
  0x7d   :  { %p1809_p9 = por %p1808_p8, %p1807_p7 }
  0x7f   :  { %1370 = vmatmul.mubr.f32.gmra.mxu0 %v94_v40  ;;  %p1810_p10 = pnand %p1809_p9, %p1803_p6 }
  0x80   :  { %1439 = vmatprep.mubr.msk.f32.mxu0 %vm1859_vm0, %v1858_v0 }
 0x114   :  { %v1362_v41 = vpop.f32.mrf.mxu0  ;;  %v315_v42 = vpop.f32.mrf.mxu1 }
 0x115   :  { %v190_v55 = vadd.f32 %v1362_v41, %v2066_v43 }
 0x116   :  { %v184_v44 = vpop.f32.mrf.mxu0  ;;  %v1406_v45 = vpop.f32.mrf.mxu1 }
 0x117   :  { %v185_v46 = vadd.f32 %v2066_v43, %v184_v44 }
 0x119   :  { %v319_v47 = vadd.f32 %v315_v42, %v185_v46 }
 0x11b   :  { %1706 = vtanh.f32 %v319_v47 }
 0x128   :  { %v2069_v48 = vpop.eup %1706 }
 0x129   :  { %1440 = vmatmul.mubr.f32.vlgmr.msra.gmra.mxu0 %v2069_v48 }
 0x12a   :  { %1478 = vmatpush3.msra.mxu0 %v1929_v3  ;;  %1509 = vmatprep.mubr.msk.f32.mxu0 %vm1859_vm0, %v1858_v0 }
 0x12b   :  { %1479 = vmatprep.subr.mxu0 %v1858_v0 }
 0x12c   :  { %1480 = vmatpush3.msra.mxu0 %v1932_v4 }
 0x12d   :  { %1481 = vmatprep.subr.mxu0 %v1858_v0 }
 0x12e   :  { %1482 = vmatpush3.msra.mxu0 %v1935_v6 }
 0x12f   :  { %1483 = vmatprep.subr.mxu0 %v1858_v0 }
 0x130   :  { %1484 = vmatpush3.msra.mxu0 %v1939_v8 }
 0x131   :  { %1485 = vmatprep.subr.mxu0 %v1858_v0 }
 0x132   :  { %1486 = vmatpush3.msra.mxu0 %v1943_v10 }
 0x133   :  { %1487 = vmatprep.subr.mxu0 %v1858_v0 }
 0x134   :  { %1488 = vmatpush3.msra.mxu0 %v1947_v12 }
 0x135   :  { %1489 = vmatprep.subr.mxu0 %v1858_v0 }
 0x136   :  { %1490 = vmatpush3.msra.mxu0 %v1951_v14 }
 0x137   :  { %1491 = vmatprep.subr.mxu0 %v1858_v0  ;;  %v2106_v49 = vpop.f32.mrf.mxu0 }
 0x138   :  { %1492 = vmatpush3.msra.mxu0 %v1955_v16  ;;  %v200_v2 = vadd.f32 %v2106_v49, %v2066_v43 }
 0x139   :  { %1493 = vmatprep.subr.mxu0 %v1858_v0  ;;  %v194_v50 = vpop.f32.mrf.mxu0 }
 0x13a   :  { %1494 = vmatpush3.msra.mxu0 %v1959_v18  ;;  %v195_v60 = vadd.f32 %v2066_v43, %v194_v50 }
 0x13b   :  { %1495 = vmatprep.subr.mxu0 %v1858_v0  ;;  %v2108_v51 = vpop.f32.mrf.mxu0 }
 0x13c   :  { %1496 = vmatpush3.msra.mxu0 %v1963_v20 }
 0x13d   :  { %1497 = vmatprep.subr.mxu0 %v1858_v0  ;;  %v2110_v52 = vpop.f32.mrf.mxu0 }
 0x13e   :  { %1498 = vmatpush3.msra.mxu0 %v1967_v22  ;;  %v205_v13 = vadd.f32 %v2066_v43, %v2110_v52 }
 0x13f   :  { %1499 = vmatprep.subr.mxu0 %v1858_v0  ;;  %v2112_v53 = vpop.f32.mrf.mxu0 }
 0x140   :  { %1500 = vmatpush3.msra.mxu0 %v1971_v24 }
 0x141   :  { %1501 = vmatprep.subr.mxu0 %v1858_v0  ;;  %v2114_v54 = vpop.f32.mrf.mxu0 }
 0x142   :  { %1502 = vmatpush3.msra.mxu0 %v1975_v26  ;;  %v215_v32 = vadd.f32 %v2066_v43, %v2114_v54 }
 0x143   :  { %1503 = vmatprep.subr.mxu0 %v1858_v0 }
 0x144   :  { %1504 = vmatpush3.msra.mxu0 %v1979_v28 }
 0x145   :  { %1505 = vmatprep.subr.mxu0 %v1858_v0 }
 0x146   :  { %1506 = vmatpush3.msra.mxu0 %v1984_v31 }
 0x147   :  { %1507 = vmatprep.subr.mxu0 %v1858_v0 }
 0x148   :  { %1508 = vmatpush3.msra.mxu0 %v1987_v33 }
 0x149   :  { %1547 = vmatprep.subr.mxu0 %v1858_v0 }
 0x1e9   :  { %v406_v56 = vpop.f32.mrf.mxu0 }
 0x1ea   :  { %v410_v57 = vadd.f32 %v406_v56, %v190_v55 }
 0x1eb   :  { %v1441_v58 = vpop.f32.mrf.mxu0 }
 0x1ec   :  { %1708 = vtanh.f32 %v410_v57 }
 0x1f9   :  { %v2117_v59 = vpop.eup %1708 }
 0x1fa   :  { %1475 = vmatmul.mubr.f32.vlgmr.msra.gmra.mxu1 %v2117_v59 }
 0x1fb   :  { %1513 = vmatpush3.msra.mxu1 %v1929_v3  ;;  %1544 = vmatprep.mubr.msk.f32.mxu1 %vm1859_vm0, %v1858_v0 }
 0x1fc   :  { %1514 = vmatprep.subr.mxu1 %v1858_v0 }
 0x1fd   :  { %1515 = vmatpush3.msra.mxu1 %v1932_v4 }
 0x1fe   :  { %1516 = vmatprep.subr.mxu1 %v1858_v0 }
 0x1ff   :  { %1517 = vmatpush3.msra.mxu1 %v1935_v6 }
 0x200   :  { %1518 = vmatprep.subr.mxu1 %v1858_v0 }
 0x201   :  { %1519 = vmatpush3.msra.mxu1 %v1939_v8 }
 0x202   :  { %1520 = vmatprep.subr.mxu1 %v1858_v0 }
 0x203   :  { %1521 = vmatpush3.msra.mxu1 %v1943_v10 }
 0x204   :  { %1522 = vmatprep.subr.mxu1 %v1858_v0 }
 0x205   :  { %1523 = vmatpush3.msra.mxu1 %v1947_v12 }
 0x206   :  { %1524 = vmatprep.subr.mxu1 %v1858_v0 }
 0x207   :  { %1525 = vmatpush3.msra.mxu1 %v1951_v14 }
 0x208   :  { %1526 = vmatprep.subr.mxu1 %v1858_v0 }
 0x209   :  { %1527 = vmatpush3.msra.mxu1 %v1955_v16 }
 0x20a   :  { %1528 = vmatprep.subr.mxu1 %v1858_v0 }
 0x20b   :  { %1529 = vmatpush3.msra.mxu1 %v1959_v18 }
 0x20c   :  { %1530 = vmatprep.subr.mxu1 %v1858_v0 }
 0x20d   :  { %1531 = vmatpush3.msra.mxu1 %v1963_v20 }
 0x20e   :  { %1532 = vmatprep.subr.mxu1 %v1858_v0 }
 0x20f   :  { %1533 = vmatpush3.msra.mxu1 %v1967_v22 }
 0x210   :  { %1534 = vmatprep.subr.mxu1 %v1858_v0 }
 0x211   :  { %1535 = vmatpush3.msra.mxu1 %v1971_v24 }
 0x212   :  { %1536 = vmatprep.subr.mxu1 %v1858_v0 }
 0x213   :  { %1537 = vmatpush3.msra.mxu1 %v1975_v26 }
 0x214   :  { %1538 = vmatprep.subr.mxu1 %v1858_v0 }
 0x215   :  { %1539 = vmatpush3.msra.mxu1 %v1979_v28 }
 0x216   :  { %1540 = vmatprep.subr.mxu1 %v1858_v0 }
 0x217   :  { %1541 = vmatpush3.msra.mxu1 %v1984_v31 }
 0x218   :  { %1542 = vmatprep.subr.mxu1 %v1858_v0 }
 0x219   :  { %1543 = vmatpush3.msra.mxu1 %v1987_v33 }
 0x21a   :  { %1582 = vmatprep.subr.mxu1 %v1858_v0 }
 0x2ba   :  { %v497_v61 = vpop.f32.mrf.mxu1 }
 0x2bb   :  { %v501_v62 = vadd.f32 %v497_v61, %v195_v60 }
 0x2bc   :  { %v1476_v63 = vpop.f32.mrf.mxu1 }
 0x2bd   :  { %1710 = vtanh.f32 %v501_v62 }
 0x2ca   :  { %v2155_v1 = vpop.eup %1710 }
 0x2cb   :  { %1510 = vmatmul.mubr.f32.vlgmr.msra.gmra.mxu0 %v2155_v1 }
 0x2cc   :  { %1548 = vmatpush3.msra.mxu0 %v1929_v3  ;;  %1579 = vmatprep.mubr.msk.f32.mxu0 %vm1859_vm0, %v1858_v0 }
 0x2cd   :  { %1549 = vmatprep.subr.mxu0 %v1858_v0 }
 0x2ce   :  { %1550 = vmatpush3.msra.mxu0 %v1932_v4 }
 0x2cf   :  { %1551 = vmatprep.subr.mxu0 %v1858_v0 }
 0x2d0   :  { %1552 = vmatpush3.msra.mxu0 %v1935_v6 }
 0x2d1   :  { %1553 = vmatprep.subr.mxu0 %v1858_v0 }
 0x2d2   :  { %1554 = vmatpush3.msra.mxu0 %v1939_v8 }
 0x2d3   :  { %1555 = vmatprep.subr.mxu0 %v1858_v0 }
 0x2d4   :  { %1556 = vmatpush3.msra.mxu0 %v1943_v10 }
 0x2d5   :  { %1557 = vmatprep.subr.mxu0 %v1858_v0 }
 0x2d6   :  { %1558 = vmatpush3.msra.mxu0 %v1947_v12 }
 0x2d7   :  { %1559 = vmatprep.subr.mxu0 %v1858_v0 }
 0x2d8   :  { %1560 = vmatpush3.msra.mxu0 %v1951_v14 }
 0x2d9   :  { %1561 = vmatprep.subr.mxu0 %v1858_v0 }
 0x2da   :  { %1562 = vmatpush3.msra.mxu0 %v1955_v16 }
 0x2db   :  { %1563 = vmatprep.subr.mxu0 %v1858_v0 }
 0x2dc   :  { %1564 = vmatpush3.msra.mxu0 %v1959_v18 }
 0x2dd   :  { %1565 = vmatprep.subr.mxu0 %v1858_v0 }
 0x2de   :  { %1566 = vmatpush3.msra.mxu0 %v1963_v20 }
 0x2df   :  { %1567 = vmatprep.subr.mxu0 %v1858_v0 }
 0x2e0   :  { %1568 = vmatpush3.msra.mxu0 %v1967_v22 }
 0x2e1   :  { %1569 = vmatprep.subr.mxu0 %v1858_v0 }
 0x2e2   :  { %1570 = vmatpush3.msra.mxu0 %v1971_v24 }
 0x2e3   :  { %1571 = vmatprep.subr.mxu0 %v1858_v0 }
 0x2e4   :  { %1572 = vmatpush3.msra.mxu0 %v1975_v26 }
 0x2e5   :  { %1573 = vmatprep.subr.mxu0 %v1858_v0 }
 0x2e6   :  { %1574 = vmatpush3.msra.mxu0 %v1979_v28 }
 0x2e7   :  { %1575 = vmatprep.subr.mxu0 %v1858_v0 }
 0x2e8   :  { %1576 = vmatpush3.msra.mxu0 %v1984_v31 }
 0x2e9   :  { %1577 = vmatprep.subr.mxu0 %v1858_v0 }
 0x2ea   :  { %1578 = vmatpush3.msra.mxu0 %v1987_v33 }
 0x2eb   :  { %1617 = vmatprep.subr.mxu0 %v1858_v0 }
 0x38b   :  { %v588_v5 = vpop.f32.mrf.mxu0 }
 0x38c   :  { %v592_v7 = vadd.f32 %v588_v5, %v200_v2 }
 0x38d   :  { %v1511_v9 = vpop.f32.mrf.mxu0 }
 0x38e   :  { %1712 = vtanh.f32 %v592_v7 }
 0x39b   :  { %v2194_v11 = vpop.eup %1712 }
 0x39c   :  { %1545 = vmatmul.mubr.f32.vlgmr.msra.gmra.mxu1 %v2194_v11 }
 0x39d   :  { %1583 = vmatpush3.msra.mxu1 %v1929_v3  ;;  %1614 = vmatprep.mubr.msk.f32.mxu1 %vm1859_vm0, %v1858_v0 }
 0x39e   :  { %1584 = vmatprep.subr.mxu1 %v1858_v0 }
 0x39f   :  { %1585 = vmatpush3.msra.mxu1 %v1932_v4 }
 0x3a0   :  { %1586 = vmatprep.subr.mxu1 %v1858_v0 }
 0x3a1   :  { %1587 = vmatpush3.msra.mxu1 %v1935_v6 }
 0x3a2   :  { %1588 = vmatprep.subr.mxu1 %v1858_v0 }
 0x3a3   :  { %1589 = vmatpush3.msra.mxu1 %v1939_v8 }
 0x3a4   :  { %1590 = vmatprep.subr.mxu1 %v1858_v0 }
 0x3a5   :  { %1591 = vmatpush3.msra.mxu1 %v1943_v10 }
 0x3a6   :  { %1592 = vmatprep.subr.mxu1 %v1858_v0 }
 0x3a7   :  { %1593 = vmatpush3.msra.mxu1 %v1947_v12 }
 0x3a8   :  { %1594 = vmatprep.subr.mxu1 %v1858_v0 }
 0x3a9   :  { %1595 = vmatpush3.msra.mxu1 %v1951_v14 }
 0x3aa   :  { %1596 = vmatprep.subr.mxu1 %v1858_v0 }
 0x3ab   :  { %1597 = vmatpush3.msra.mxu1 %v1955_v16 }
 0x3ac   :  { %1598 = vmatprep.subr.mxu1 %v1858_v0 }
 0x3ad   :  { %1599 = vmatpush3.msra.mxu1 %v1959_v18 }
 0x3ae   :  { %1600 = vmatprep.subr.mxu1 %v1858_v0 }
 0x3af   :  { %1601 = vmatpush3.msra.mxu1 %v1963_v20 }
 0x3b0   :  { %1602 = vmatprep.subr.mxu1 %v1858_v0 }
 0x3b1   :  { %1603 = vmatpush3.msra.mxu1 %v1967_v22 }
 0x3b2   :  { %1604 = vmatprep.subr.mxu1 %v1858_v0 }
 0x3b3   :  { %1605 = vmatpush3.msra.mxu1 %v1971_v24 }
 0x3b4   :  { %1606 = vmatprep.subr.mxu1 %v1858_v0 }
 0x3b5   :  { %1607 = vmatpush3.msra.mxu1 %v1975_v26 }
 0x3b6   :  { %1608 = vmatprep.subr.mxu1 %v1858_v0 }
 0x3b7   :  { %1609 = vmatpush3.msra.mxu1 %v1979_v28 }
 0x3b8   :  { %1610 = vmatprep.subr.mxu1 %v1858_v0 }
 0x3b9   :  { %1611 = vmatpush3.msra.mxu1 %v1984_v31 }
 0x3ba   :  { %1612 = vmatprep.subr.mxu1 %v1858_v0 }
 0x3bb   :  { %1613 = vmatpush3.msra.mxu1 %v1987_v33 }
 0x45c   :  { %v679_v15 = vpop.f32.mrf.mxu1 }
 0x45d   :  { %v683_v17 = vadd.f32 %v679_v15, %v205_v13 }
 0x45e   :  { %v1546_v19 = vpop.f32.mrf.mxu1 }
 0x45f   :  { %1714 = vtanh.f32 %v683_v17 }
 0x46c   :  { %v2232_v21 = vpop.eup %1714 }
 0x46d   :  { %1580 = vmatmul.mubr.f32.vlgmr.msra.gmra.mxu0 %v2232_v21 }
 0x46e   :  { %1618 = vmatpush3.msra.mxu0 %v1929_v3  ;;  %1649 = vmatprep.mubr.msk.f32.mxu0 %vm1859_vm0, %v1858_v0  ;;  %v988_v3 = vld [vmem:[#allocation10 + $0x78] sm:$0xff] }
 0x46f   :  { %1619 = vmatprep.subr.mxu0 %v1858_v0  ;;  %1652 = vmatprep.subr.mxu1 %v988_v3 }
 0x470   :  { %1620 = vmatpush3.msra.mxu0 %v1932_v4  ;;  %v210_v4 = vadd.f32 %v2108_v51, %v2066_v43  ;;  %v220_v51 = vadd.f32 %v2112_v53, %v2066_v43 }
 0x471   :  { %1621 = vmatprep.subr.mxu0 %v1858_v0 }
 0x472   :  { %1622 = vmatpush3.msra.mxu0 %v1935_v6 }
 0x473   :  { %1623 = vmatprep.subr.mxu0 %v1858_v0 }
 0x474   :  { %1624 = vmatpush3.msra.mxu0 %v1939_v8 }
 0x475   :  { %1625 = vmatprep.subr.mxu0 %v1858_v0 }
 0x476   :  { %1626 = vmatpush3.msra.mxu0 %v1943_v10 }
 0x477   :  { %1627 = vmatprep.subr.mxu0 %v1858_v0 }
 0x478   :  { %1628 = vmatpush3.msra.mxu0 %v1947_v12 }
 0x479   :  { %1629 = vmatprep.subr.mxu0 %v1858_v0 }
 0x47a   :  { %1630 = vmatpush3.msra.mxu0 %v1951_v14  ;;  %v987_v14 = vld [vmem:[#allocation10 + $0x70] sm:$0xff] }
 0x47b   :  { %1631 = vmatprep.subr.mxu0 %v1858_v0 }
 0x47c   :  { %1632 = vmatpush3.msra.mxu0 %v1955_v16  ;;  %v986_v16 = vld [vmem:[#allocation10 + $0x68] sm:$0xff] }
 0x47d   :  { %1633 = vmatprep.subr.mxu0 %v1858_v0 }
 0x47e   :  { %1634 = vmatpush3.msra.mxu0 %v1959_v18  ;;  %v984_v18 = vld [vmem:[#allocation10 + $0x58] sm:$0xff] }
 0x47f   :  { %1635 = vmatprep.subr.mxu0 %v1858_v0 }
 0x480   :  { %1636 = vmatpush3.msra.mxu0 %v1963_v20  ;;  %v983_v20 = vld [vmem:[#allocation10 + $0x50] sm:$0xff] }
 0x481   :  { %1637 = vmatprep.subr.mxu0 %v1858_v0 }
 0x482   :  { %1638 = vmatpush3.msra.mxu0 %v1967_v22  ;;  %v982_v22 = vld [vmem:[#allocation10 + $0x48] sm:$0xff] }
 0x483   :  { %1639 = vmatprep.subr.mxu0 %v1858_v0 }
 0x484   :  { %1640 = vmatpush3.msra.mxu0 %v1971_v24  ;;  %v980_v24 = vld [vmem:[#allocation10 + $0x38] sm:$0xff] }
 0x485   :  { %1641 = vmatprep.subr.mxu0 %v1858_v0 }
 0x486   :  { %1642 = vmatpush3.msra.mxu0 %v1975_v26  ;;  %v978_v26 = vld [vmem:[#allocation10 + $0x28] sm:$0xff] }
 0x487   :  { %1643 = vmatprep.subr.mxu0 %v1858_v0 }
 0x488   :  { %1644 = vmatpush3.msra.mxu0 %v1979_v28  ;;  %v976_v28 = vld [vmem:[#allocation10 + $0x18] sm:$0xff] }
 0x489   :  { %1645 = vmatprep.subr.mxu0 %v1858_v0 }
 0x48a   :  { %1646 = vmatpush3.msra.mxu0 %v1984_v31  ;;  %v973_v31 = vld [vmem:[#allocation10] sm:$0xff] }
 0x48b   :  { %1647 = vmatprep.subr.mxu0 %v1858_v0  ;;  %v985_v0 = vld [vmem:[#allocation10 + $0x60] sm:$0xff] }
 0x48c   :  { %1648 = vmatpush3.msra.mxu0 %v1987_v33 }
 0x52d   :  { %v770_v6 = vpop.f32.mrf.mxu0 }
 0x52e   :  { %v774_v8 = vadd.f32 %v770_v6, %v210_v4 }
 0x52f   :  { %v1581_v10 = vpop.f32.mrf.mxu0 }
 0x530   :  { %1716 = vtanh.f32 %v774_v8 }
 0x53d   :  { %v1717_v12 = vpop.eup %1716 }
 0x53e   :  { %1615 = vmatmul.mubr.f32.vlgmr.msra.gmra.mxu1 %v1717_v12 }
 0x53f   :  { %1653 = vmatpush3.msra.mxu1 %v988_v3  ;;  %1684 = vmatprep.mubr.f32.mxu1 %v2069_v48 }
 0x540   :  { %1654 = vmatprep.subr.mxu1 %v987_v14 }
 0x541   :  { %1655 = vmatpush3.msra.mxu1 %v987_v14 }
 0x542   :  { %1656 = vmatprep.subr.mxu1 %v986_v16 }
 0x543   :  { %1657 = vmatpush3.msra.mxu1 %v986_v16 }
 0x544   :  { %1658 = vmatprep.subr.mxu1 %v985_v0 }
 0x545   :  { %1659 = vmatpush3.msra.mxu1 %v985_v0 }
 0x546   :  { %1660 = vmatprep.subr.mxu1 %v984_v18 }
 0x547   :  { %1661 = vmatpush3.msra.mxu1 %v984_v18 }
 0x548   :  { %1662 = vmatprep.subr.mxu1 %v983_v20 }
 0x549   :  { %1663 = vmatpush3.msra.mxu1 %v983_v20 }
 0x54a   :  { %1664 = vmatprep.subr.mxu1 %v982_v22 }
 0x54b   :  { %1665 = vmatpush3.msra.mxu1 %v982_v22 }
 0x54c   :  { %1666 = vmatprep.subr.mxu1 %v981_v23 }
 0x54d   :  { %1667 = vmatpush3.msra.mxu1 %v981_v23 }
 0x54e   :  { %1668 = vmatprep.subr.mxu1 %v980_v24 }
 0x54f   :  { %1669 = vmatpush3.msra.mxu1 %v980_v24 }
 0x550   :  { %1670 = vmatprep.subr.mxu1 %v979_v25 }
 0x551   :  { %1671 = vmatpush3.msra.mxu1 %v979_v25 }
 0x552   :  { %1672 = vmatprep.subr.mxu1 %v978_v26 }
 0x553   :  { %1673 = vmatpush3.msra.mxu1 %v978_v26 }
 0x554   :  { %1674 = vmatprep.subr.mxu1 %v977_v27 }
 0x555   :  { %1675 = vmatpush3.msra.mxu1 %v977_v27 }
 0x556   :  { %1676 = vmatprep.subr.mxu1 %v976_v28 }
 0x557   :  { %1677 = vmatpush3.msra.mxu1 %v976_v28 }
 0x558   :  { %1678 = vmatprep.subr.mxu1 %v975_v29 }
 0x559   :  { %1679 = vmatpush3.msra.mxu1 %v975_v29 }
 0x55a   :  { %1680 = vmatprep.subr.mxu1 %v974_v30 }
 0x55b   :  { %1681 = vmatpush3.msra.mxu1 %v974_v30 }
 0x55c   :  { %1682 = vmatprep.subr.mxu1 %v973_v31 }
 0x55d   :  { %1683 = vmatpush3.msra.mxu1 %v973_v31 }
 0x55e   :  { %1685 = vmatmul.mubr.f32.vlgmr.msra.gmra.mxu1 %v2117_v59 }
 0x55f   :  { %1687 = vmatprep.mubr.f32.mxu1 %v2155_v1 }
 0x562   :  { %1688 = vmatmul.mubr.f32.gmra.mxu1 %v2194_v11 }
 0x563   :  { %1690 = vmatprep.mubr.f32.mxu1 %v2232_v21 }
 0x566   :  { %1691 = vmatmul.mubr.f32.gmra.mxu1 %v1717_v12 }
 0x5fe   :  { %v861_v33 = vpop.f32.mrf.mxu1 }
 0x5ff   :  { %v865_v34 = vadd.f32 %v861_v33, %v215_v32 }
 0x600   :  { %v1616_v35 = vpop.f32.mrf.mxu1 }
 0x601   :  { %1718 = vtanh.f32 %v865_v34 }
 0x60e   :  { %v1719_v36 = vpop.eup %1718 }
 0x60f   :  { %1650 = vmatmul.mubr.f32.vlgmr.msra.gmra.mxu0 %v1719_v36  ;;  %1693 = vmatprep.mubr.f32.mxu1 %v1719_v36 }
 0x61e   :  { %v1686_v38 = vpop.f32.mrf.mxu1 }
 0x61f   :  { %v1068_v39 = vadd.f32 %v1686_v38, %v1143_v37 }
 0x620   :  { %v1062_v40 = vpop.f32.mrf.mxu1 }
 0x621   :  { %1102 = vst [vmem:[#allocation12 + $0x8] sm:$0xff] %v1068_v39  ;;  %v1063_v41 = vadd.f32 %v1143_v37, %v1062_v40 }
 0x622   :  { %v1689_v42 = vpop.f32.mrf.mxu1 }
 0x623   :  { %1101 = vst [vmem:[#allocation12] sm:$0xff] %v1063_v41  ;;  %v1078_v44 = vadd.f32 %v1689_v42, %v1143_v37 }
 0x624   :  { %v1072_v45 = vpop.f32.mrf.mxu1 }
 0x625   :  { %1104 = vst [vmem:[#allocation12 + $0x18] sm:$0xff] %v1078_v44  ;;  %v1073_v46 = vadd.f32 %v1143_v37, %v1072_v45 }
 0x626   :  { %v1692_v47 = vpop.f32.mrf.mxu1 }
 0x627   :  { %1103 = vst [vmem:[#allocation12 + $0x10] sm:$0xff] %v1073_v46  ;;  %v1088_v48 = vadd.f32 %v1692_v47, %v1143_v37 }
 0x628   :  { %v1082_v49 = vpop.f32.mrf.mxu1 }
 0x629   :  { %1106 = vst [vmem:[#allocation12 + $0x28] sm:$0xff] %v1088_v48  ;;  %v1083_v50 = vadd.f32 %v1143_v37, %v1082_v49 }
 0x62b   :  { %1105 = vst [vmem:[#allocation12 + $0x20] sm:$0xff] %v1083_v50 }
 0x6cf   :  { %v952_v52 = vpop.f32.mrf.mxu0 }
 0x6d0   :  { %v956_v54 = vadd.f32 %v952_v52, %v220_v51 }
 0x6d1   :  { %v1651_v55 = vpop.f32.mrf.mxu0 }
 0x6d2   :  { %1720 = vtanh.f32 %v956_v54 }
 0x6df   :  { %v1721_v56 = vpop.eup %1720 }
 0x6e0   :  { %964 = vst [vmem:[#allocation13] sm:$0xff] %v1721_v56  ;;  %1694 = vmatmul.mubr.f32.gmra.mxu1 %v1721_v56 }
 0x6e1   :  { %1813 = shalt.err (!%p1810_p10)
}
 0x6e2   :  { %1130 = dma.vmem_to_hbm [thread:$0]  %s1128_s22, 128, %s2298_s7, [#allocation14]  }
 0x6e3   :  { %s1861_s26 = smov [#allocation12]  }
 0x6e4   :  { %s1114_s27 = sshll.u32 %s1861_s26, 4  ;;  %s1115_s27 = int_to_ptr.vmem [resolvable:$true] %s1114_s27 }
 0x6e5   :  { %s1822_s28 = scalar_lea.vmem %s1115_s27, 1024  ;;  %p1827_p12 = scmp.lt.s32.totalorder %s1115_s27, %s1115_s27 }
 0x6e6   :  { %p1823_p11 = scmp.ne.s32.totalorder %s1115_s27, %s1822_s28  ;;  %p1828_p13 = scmp.lt.s32.totalorder %s1822_s28, %s1822_s28 }
 0x6e8   :  { %p1829_p0 = por %p1828_p13, %p1827_p12 }
 0x6ea   :  { %p1830_p1 = pnand %p1829_p0, %p1823_p11 }
 0x7a0   :  { %v1695_v43 = vpop.f32.mrf.mxu1 }
 0x7a1   :  { %v1098_v53 = vadd.f32 %v1695_v43, %v1143_v37 }
 0x7a2   :  { %v1092_v57 = vpop.f32.mrf.mxu1 }
 0x7a3   :  { %1108 = vst [vmem:[#allocation12 + $0x38] sm:$0xff] %v1098_v53  ;;  %v1093_v58 = vadd.f32 %v1143_v37, %v1092_v57 }
 0x7a5   :  { %1107 = vst [vmem:[#allocation12 + $0x30] sm:$0xff] %v1093_v58 }
 0x7a6   :  { %1833 = shalt.err (!%p1830_p1)
}
 0x7a7   :  { %1120 = dma.vmem_to_hbm [thread:$0]  %s1115_s27, 1024, %s2297_s6, [#allocation6], %s1854_s29, %s1854_s29, %s1855_s30  }
 0x7a8   :  { %1848 = dma.done.wait [#allocation6], 1024  }
 0x7a9   :  { %1849 = vsyncadd [#allocation6], 4294966272 }
 0x7aa   :  { %1850 = dma.done.wait [#allocation14], 128  }
 0x7ab   :  { %1851 = vsyncadd [#allocation14], 4294967168 }
 0x7ac   :  { %1137 = vsyncpa [#allocation5], 1 }
 0x7ad   :  { %1138 = vsyncpa [#allocation8], 1 }
 0x7ae   :  { %1139 = vsyncpa [#allocation11], 1 }
 0x7af   :  { %1140 = vsyncpa [#allocation6], 1 }
 0x7b0   :  { %1141 = vsyncpa [#allocation14], 1 }

// kernel: tpu_custom_call.1
= control target key start
LH: loop header
LB: loop body
LE: loop exit
PB: predicated region body
PF: predicated region fallthrough
CT: control target
= control target key end

     0   :  { %13 = vsyncpa [#allocation5], 0  ;;  %s2291_s0 = inlined_call_operand.hbm [shape: f32[8,8,128], index: 0, kind: input, shape index: {}]   ;;  %s2292_s1 = inlined_call_operand.hbm [shape: f32[128,128], index: 1, kind: input, shape index: {}]   ;;  %s2293_s2 = inlined_call_operand.hbm [shape: f32[128,128], index: 2, kind: input, shape index: {}]   ;;  %s2294_s3 = inlined_call_operand.hbm [shape: f32[128,128], index: 3, kind: input, shape index: {}]   ;;  %s2295_s4 = inlined_call_operand.vmem [shape: f32[1,128], index: 4, kind: input, shape index: {}]   ;;  %s2296_s5 = inlined_call_operand.vmem [shape: f32[1,128], index: 5, kind: input, shape index: {}]   ;;  %s2297_s6 = inlined_call_operand.hbm [shape: f32[8,8,128], index: 6, kind: output, shape index: {0}]   ;;  %s2298_s7 = inlined_call_operand.hbm [shape: f32[8,128], index: 7, kind: output, shape index: {1}]  }
   0x1   :  { %14 = vsyncpa [#allocation8], 0 }
   0x2   :  { %15 = vsyncpa [#allocation11], 0 }
   0x3   :  { %16 = vsyncpa [#allocation6], 0 }
   0x4   :  { %17 = vsyncpa [#allocation14], 0  ;;  %s1852_s24 = smov [#allocation7]   ;;  %s1853_s26 = smov [#allocation4]  }
   0x5   :  { %s35_s25 = sshll.u32 %s1852_s24, 4  ;;  %s23_s27 = sshll.u32 %s1853_s26, 4  ;;  %s36_s25 = int_to_ptr.vmem [resolvable:$true] %s35_s25  ;;  %s24_s27 = int_to_ptr.vmem [resolvable:$true] %s23_s27 }
   0x6   :  { %s1730_s28 = scalar_lea.vmem %s36_s25, 2048  ;;  %p1735_p1 = scmp.lt.s32.totalorder %s36_s25, %s36_s25 }
   0x7   :  { %p1731_p0 = scmp.ne.s32.totalorder %s36_s25, %s1730_s28  ;;  %p1736_p2 = scmp.lt.s32.totalorder %s1730_s28, %s1730_s28 }
   0x9   :  { %p1737_p3 = por %p1736_p2, %p1735_p1 }
   0xb   :  { %p1738_p4 = pnand %p1737_p3, %p1731_p0 }
   0xd   :  { %1741 = shalt.err (!%p1738_p4)
}
   0xe   :  { %s1854_s29 = smov 128   ;;  %s1855_s30 = smov 8  }
   0xf   :  { %41 = dma.hbm_to_vmem [thread:$0]  %s2292_s1, 2048, %s36_s25, [#allocation8], %s1854_s29, %s1854_s29, %s1855_s30  }
  0x10   :  { %s1750_s10 = scalar_lea.vmem %s24_s27, 1024  ;;  %p1755_p6 = scmp.lt.s32.totalorder %s24_s27, %s24_s27 }
  0x11   :  { %p1751_p5 = scmp.ne.s32.totalorder %s24_s27, %s1750_s10  ;;  %p1756_p7 = scmp.lt.s32.totalorder %s1750_s10, %s1750_s10 }
  0x13   :  { %p1757_p8 = por %p1756_p7, %p1755_p6 }
  0x15   :  { %p1758_p9 = pnand %p1757_p8, %p1751_p5 }
  0x17   :  { %1761 = shalt.err (!%p1758_p9)
}
  0x18   :  { %29 = dma.hbm_to_vmem [thread:$0]  %s2291_s0, 1024, %s24_s27, [#allocation5], %s1854_s29, %s1854_s29, %s1855_s30  }
  0x19   :  { %s1856_s13 = smov [#allocation9]   ;;  %s1857_s15 = smov [#allocation10]  }
  0x1a   :  { %s47_s14 = sshll.u32 %s1856_s13, 4  ;;  %s59_s16 = sshll.u32 %s1857_s15, 4  ;;  %s48_s14 = int_to_ptr.vmem [resolvable:$true] %s47_s14  ;;  %s60_s16 = int_to_ptr.vmem [resolvable:$true] %s59_s16 }
  0x1b   :  { %s1770_s1 = scalar_lea.vmem %s48_s14, 2048  ;;  %p1775_p11 = scmp.lt.s32.totalorder %s48_s14, %s48_s14 }
  0x1c   :  { %p1771_p10 = scmp.ne.s32.totalorder %s48_s14, %s1770_s1  ;;  %p1776_p12 = scmp.lt.s32.totalorder %s1770_s1, %s1770_s1 }
  0x1e   :  { %p1777_p13 = por %p1776_p12, %p1775_p11 }
  0x20   :  { %p1778_p0 = pnand %p1777_p13, %p1771_p10 }
  0x22   :  { %1781 = shalt.err (!%p1778_p0)
}
  0x23   :  { %53 = dma.hbm_to_vmem [thread:$0]  %s2293_s2, 2048, %s48_s14, [#allocation8], %s1854_s29, %s1854_s29, %s1855_s30  }
  0x24   :  { %s1790_s0 = scalar_lea.vmem %s60_s16, 2048  ;;  %p1795_p2 = scmp.lt.s32.totalorder %s60_s16, %s60_s16 }
  0x25   :  { %p1791_p1 = scmp.ne.s32.totalorder %s60_s16, %s1790_s0  ;;  %p1796_p3 = scmp.lt.s32.totalorder %s1790_s0, %s1790_s0 }
  0x27   :  { %p1797_p4 = por %p1796_p3, %p1795_p2 }
  0x29   :  { %p1798_p5 = pnand %p1797_p4, %p1791_p1 }
  0x2b   :  { %1801 = shalt.err (!%p1798_p5)
}
  0x2c   :  { %65 = dma.hbm_to_vmem [thread:$0]  %s2294_s3, 2048, %s60_s16, [#allocation11], %s1854_s29, %s1854_s29, %s1855_s30  }
  0x2d   :  { %1842 = dma.done.wait [#allocation5], 1024  }
  0x2e   :  { %1843 = vsyncadd [#allocation5], 4294966272 }
  0x2f   :  { %1844 = dma.done.wait [#allocation8], 4096  }
  0x30   :  { %1845 = vsyncadd [#allocation8], 4294963200 }
  0x31   :  { %1846 = dma.done.wait [#allocation11], 2048  }
  0x32   :  { %1847 = vsyncadd [#allocation11], 4294965248  ;;  %v1858_v0 = vmov 0.0   ;;  %vm1859_vm0 = vmmov 0   ;;  %v110_v1 = vld [vmem:[#allocation7 + $0x78] sm:$0xff]  ;;  %v109_v2 = vld [vmem:[#allocation7 + $0x70] sm:$0xff] }
  0x33   :  { %1372 = vmatprep.subr.mxu1 %v1858_v0  ;;  %1404 = vmatprep.mubr.msk.f32.mxu1 %vm1859_vm0, %v1858_v0  ;;  %v1929_v3 = vld [vmem:[#allocation9 + $0x78] sm:$0xff]  ;;  %v1932_v4 = vld [vmem:[#allocation9 + $0x70] sm:$0xff]  ;;  %v108_v5 = vld [vmem:[#allocation7 + $0x68] sm:$0xff] }
  0x34   :  { %1328 = vmatprep.subr.mxu0 %v110_v1  ;;  %1373 = vmatpush3.msra.mxu1 %v1929_v3  ;;  %v1935_v6 = vld [vmem:[#allocation9 + $0x68] sm:$0xff]  ;;  %v107_v7 = vld [vmem:[#allocation7 + $0x60] sm:$0xff]  ;;  %v106_v9 = vld [vmem:[#allocation7 + $0x58] sm:$0xff] }
  0x35   :  { %1329 = vmatpush3.msra.mxu0 %v110_v1  ;;  %1374 = vmatprep.subr.mxu1 %v1858_v0  ;;  %v1939_v8 = vld [vmem:[#allocation9 + $0x60] sm:$0xff]  ;;  %v1943_v10 = vld [vmem:[#allocation9 + $0x58] sm:$0xff]  ;;  %v105_v11 = vld [vmem:[#allocation7 + $0x50] sm:$0xff] }
  0x36   :  { %1330 = vmatprep.subr.mxu0 %v109_v2  ;;  %1375 = vmatpush3.msra.mxu1 %v1932_v4  ;;  %v1947_v12 = vld [vmem:[#allocation9 + $0x50] sm:$0xff]  ;;  %v104_v13 = vld [vmem:[#allocation7 + $0x48] sm:$0xff]  ;;  %v103_v15 = vld [vmem:[#allocation7 + $0x40] sm:$0xff] }
  0x37   :  { %1331 = vmatpush3.msra.mxu0 %v109_v2  ;;  %1376 = vmatprep.subr.mxu1 %v1858_v0  ;;  %v1951_v14 = vld [vmem:[#allocation9 + $0x48] sm:$0xff]  ;;  %v1955_v16 = vld [vmem:[#allocation9 + $0x40] sm:$0xff]  ;;  %v102_v17 = vld [vmem:[#allocation7 + $0x38] sm:$0xff] }
  0x38   :  { %1332 = vmatprep.subr.mxu0 %v108_v5  ;;  %1377 = vmatpush3.msra.mxu1 %v1935_v6  ;;  %v1959_v18 = vld [vmem:[#allocation9 + $0x38] sm:$0xff]  ;;  %v101_v19 = vld [vmem:[#allocation7 + $0x30] sm:$0xff]  ;;  %v100_v21 = vld [vmem:[#allocation7 + $0x28] sm:$0xff] }
  0x39   :  { %1333 = vmatpush3.msra.mxu0 %v108_v5  ;;  %1378 = vmatprep.subr.mxu1 %v1858_v0  ;;  %v1963_v20 = vld [vmem:[#allocation9 + $0x30] sm:$0xff]  ;;  %v1967_v22 = vld [vmem:[#allocation9 + $0x28] sm:$0xff]  ;;  %v99_v23 = vld [vmem:[#allocation7 + $0x20] sm:$0xff] }
  0x3a   :  { %1334 = vmatprep.subr.mxu0 %v107_v7  ;;  %1379 = vmatpush3.msra.mxu1 %v1939_v8  ;;  %v1971_v24 = vld [vmem:[#allocation9 + $0x20] sm:$0xff]  ;;  %v98_v25 = vld [vmem:[#allocation7 + $0x18] sm:$0xff]  ;;  %v97_v27 = vld [vmem:[#allocation7 + $0x10] sm:$0xff] }
  0x3b   :  { %1335 = vmatpush3.msra.mxu0 %v107_v7  ;;  %1380 = vmatprep.subr.mxu1 %v1858_v0  ;;  %v1975_v26 = vld [vmem:[#allocation9 + $0x18] sm:$0xff]  ;;  %v1979_v28 = vld [vmem:[#allocation9 + $0x10] sm:$0xff]  ;;  %v96_v29 = vld [vmem:[#allocation7 + $0x8] sm:$0xff] }
  0x3c   :  { %1336 = vmatprep.subr.mxu0 %v106_v9  ;;  %1381 = vmatpush3.msra.mxu1 %v1943_v10  ;;  %v87_v30 = vld [vmem:[#allocation4] sm:$0xff]  ;;  %v1984_v31 = vld [vmem:[#allocation9 + $0x8] sm:$0xff]  ;;  %v89_v35 = vld [vmem:[#allocation4 + $0x10] sm:$0xff] }
  0x3d   :  { %1337 = vmatpush3.msra.mxu0 %v106_v9  ;;  %1382 = vmatprep.subr.mxu1 %v1858_v0  ;;  %v95_v32 = vld [vmem:[#allocation7] sm:$0xff]  ;;  %v88_v34 = vld [vmem:[#allocation4 + $0x8] sm:$0xff]  ;;  %v90_v36 = vld [vmem:[#allocation4 + $0x18] sm:$0xff] }
  0x3e   :  { %1338 = vmatprep.subr.mxu0 %v105_v11  ;;  %1383 = vmatpush3.msra.mxu1 %v1947_v12  ;;  %v1987_v33 = vld [vmem:[#allocation9] sm:$0xff]  ;;  %v92_v38 = vld [vmem:[#allocation4 + $0x28] sm:$0xff]  ;;  %v93_v39 = vld [vmem:[#allocation4 + $0x30] sm:$0xff] }
  0x3f   :  { %1339 = vmatpush3.msra.mxu0 %v105_v11  ;;  %1384 = vmatprep.subr.mxu1 %v1858_v0  ;;  %v91_v37 = vld [vmem:[#allocation4 + $0x20] sm:$0xff]  ;;  %v94_v40 = vld [vmem:[#allocation4 + $0x38] sm:$0xff] }
  0x40   :  { %1340 = vmatprep.subr.mxu0 %v104_v13  ;;  %1385 = vmatpush3.msra.mxu1 %v1951_v14  ;;  %v2066_v43 = vld [vmem:[%s2295_s4] ss:$0 sm:$0xff] }
  0x41   :  { %1341 = vmatpush3.msra.mxu0 %v104_v13  ;;  %1386 = vmatprep.subr.mxu1 %v1858_v0 }
  0x42   :  { %1342 = vmatprep.subr.mxu0 %v103_v15  ;;  %1387 = vmatpush3.msra.mxu1 %v1955_v16 }
  0x43   :  { %1343 = vmatpush3.msra.mxu0 %v103_v15  ;;  %1388 = vmatprep.subr.mxu1 %v1858_v0 }
  0x44   :  { %1344 = vmatprep.subr.mxu0 %v102_v17  ;;  %1389 = vmatpush3.msra.mxu1 %v1959_v18 }
  0x45   :  { %1345 = vmatpush3.msra.mxu0 %v102_v17  ;;  %1390 = vmatprep.subr.mxu1 %v1858_v0 }
  0x46   :  { %1346 = vmatprep.subr.mxu0 %v101_v19  ;;  %1391 = vmatpush3.msra.mxu1 %v1963_v20 }
  0x47   :  { %1347 = vmatpush3.msra.mxu0 %v101_v19  ;;  %1392 = vmatprep.subr.mxu1 %v1858_v0 }
  0x48   :  { %1348 = vmatprep.subr.mxu0 %v100_v21  ;;  %1393 = vmatpush3.msra.mxu1 %v1967_v22 }
  0x49   :  { %1349 = vmatpush3.msra.mxu0 %v100_v21  ;;  %1394 = vmatprep.subr.mxu1 %v1858_v0 }
  0x4a   :  { %1350 = vmatprep.subr.mxu0 %v99_v23  ;;  %1395 = vmatpush3.msra.mxu1 %v1971_v24 }
  0x4b   :  { %1351 = vmatpush3.msra.mxu0 %v99_v23  ;;  %1396 = vmatprep.subr.mxu1 %v1858_v0  ;;  %v981_v23 = vld [vmem:[#allocation10 + $0x40] sm:$0xff] }
  0x4c   :  { %1352 = vmatprep.subr.mxu0 %v98_v25  ;;  %1397 = vmatpush3.msra.mxu1 %v1975_v26 }
  0x4d   :  { %1353 = vmatpush3.msra.mxu0 %v98_v25  ;;  %1398 = vmatprep.subr.mxu1 %v1858_v0  ;;  %v979_v25 = vld [vmem:[#allocation10 + $0x30] sm:$0xff] }
  0x4e   :  { %1354 = vmatprep.subr.mxu0 %v97_v27  ;;  %1399 = vmatpush3.msra.mxu1 %v1979_v28 }
  0x4f   :  { %1355 = vmatpush3.msra.mxu0 %v97_v27  ;;  %1400 = vmatprep.subr.mxu1 %v1858_v0  ;;  %v977_v27 = vld [vmem:[#allocation10 + $0x20] sm:$0xff] }
  0x50   :  { %1356 = vmatprep.subr.mxu0 %v96_v29  ;;  %1360 = vmatprep.mubr.f32.mxu0 %v87_v30  ;;  %v974_v30 = vld [vmem:[#allocation10 + $0x8] sm:$0xff] }
  0x51   :  { %1357 = vmatpush3.msra.mxu0 %v96_v29  ;;  %1401 = vmatpush3.msra.mxu1 %v1984_v31  ;;  %v975_v29 = vld [vmem:[#allocation10 + $0x10] sm:$0xff] }
  0x52   :  { %1358 = vmatprep.subr.mxu0 %v95_v32  ;;  %1402 = vmatprep.subr.mxu1 %v1858_v0 }
  0x53   :  { %1359 = vmatpush3.msra.mxu0 %v95_v32  ;;  %1403 = vmatpush3.msra.mxu1 %v1987_v33 }
  0x54   :  { %1361 = vmatmul.mubr.f32.vlgmr.msra.gmra.mxu0 %v88_v34  ;;  %1405 = vmatmul.mubr.f32.vlgmr.msra.gmra.mxu1 %v1858_v0 }
  0x55   :  { %1407 = vmatprep.subr.mxu0 %v1858_v0  ;;  %1442 = vmatprep.subr.mxu1 %v1858_v0 }
  0x56   :  { %1408 = vmatpush3.msra.mxu0 %v1929_v3  ;;  %1443 = vmatpush3.msra.mxu1 %v1929_v3 }
  0x57   :  { %1409 = vmatprep.subr.mxu0 %v1858_v0  ;;  %1444 = vmatprep.subr.mxu1 %v1858_v0 }
  0x58   :  { %1410 = vmatpush3.msra.mxu0 %v1932_v4  ;;  %1445 = vmatpush3.msra.mxu1 %v1932_v4 }
  0x59   :  { %1411 = vmatprep.subr.mxu0 %v1858_v0  ;;  %1446 = vmatprep.subr.mxu1 %v1858_v0 }
  0x5a   :  { %1412 = vmatpush3.msra.mxu0 %v1935_v6  ;;  %1447 = vmatpush3.msra.mxu1 %v1935_v6 }
  0x5b   :  { %1413 = vmatprep.subr.mxu0 %v1858_v0  ;;  %1448 = vmatprep.subr.mxu1 %v1858_v0 }
  0x5c   :  { %1414 = vmatpush3.msra.mxu0 %v1939_v8  ;;  %1449 = vmatpush3.msra.mxu1 %v1939_v8 }
  0x5d   :  { %1415 = vmatprep.subr.mxu0 %v1858_v0  ;;  %1450 = vmatprep.subr.mxu1 %v1858_v0 }
  0x5e   :  { %1416 = vmatpush3.msra.mxu0 %v1943_v10  ;;  %1451 = vmatpush3.msra.mxu1 %v1943_v10 }
  0x5f   :  { %1417 = vmatprep.subr.mxu0 %v1858_v0  ;;  %1452 = vmatprep.subr.mxu1 %v1858_v0 }
  0x60   :  { %1418 = vmatpush3.msra.mxu0 %v1947_v12  ;;  %1453 = vmatpush3.msra.mxu1 %v1947_v12 }
  0x61   :  { %1419 = vmatprep.subr.mxu0 %v1858_v0  ;;  %1454 = vmatprep.subr.mxu1 %v1858_v0 }
  0x62   :  { %1420 = vmatpush3.msra.mxu0 %v1951_v14  ;;  %1455 = vmatpush3.msra.mxu1 %v1951_v14 }
  0x63   :  { %1421 = vmatprep.subr.mxu0 %v1858_v0  ;;  %1456 = vmatprep.subr.mxu1 %v1858_v0 }
  0x64   :  { %1422 = vmatpush3.msra.mxu0 %v1955_v16  ;;  %1457 = vmatpush3.msra.mxu1 %v1955_v16 }
  0x65   :  { %1423 = vmatprep.subr.mxu0 %v1858_v0  ;;  %1458 = vmatprep.subr.mxu1 %v1858_v0 }
  0x66   :  { %1424 = vmatpush3.msra.mxu0 %v1959_v18  ;;  %1459 = vmatpush3.msra.mxu1 %v1959_v18 }
  0x67   :  { %1425 = vmatprep.subr.mxu0 %v1858_v0  ;;  %1460 = vmatprep.subr.mxu1 %v1858_v0 }
  0x68   :  { %1426 = vmatpush3.msra.mxu0 %v1963_v20  ;;  %1461 = vmatpush3.msra.mxu1 %v1963_v20 }
  0x69   :  { %1427 = vmatprep.subr.mxu0 %v1858_v0  ;;  %1462 = vmatprep.subr.mxu1 %v1858_v0 }
  0x6a   :  { %1428 = vmatpush3.msra.mxu0 %v1967_v22  ;;  %1463 = vmatpush3.msra.mxu1 %v1967_v22 }
  0x6b   :  { %1429 = vmatprep.subr.mxu0 %v1858_v0  ;;  %1464 = vmatprep.subr.mxu1 %v1858_v0 }
  0x6c   :  { %1430 = vmatpush3.msra.mxu0 %v1971_v24  ;;  %1465 = vmatpush3.msra.mxu1 %v1971_v24 }
  0x6d   :  { %1431 = vmatprep.subr.mxu0 %v1858_v0  ;;  %1466 = vmatprep.subr.mxu1 %v1858_v0 }
  0x6e   :  { %1432 = vmatpush3.msra.mxu0 %v1975_v26  ;;  %1467 = vmatpush3.msra.mxu1 %v1975_v26 }
  0x6f   :  { %1433 = vmatprep.subr.mxu0 %v1858_v0  ;;  %1468 = vmatprep.subr.mxu1 %v1858_v0 }
  0x70   :  { %1434 = vmatpush3.msra.mxu0 %v1979_v28  ;;  %1469 = vmatpush3.msra.mxu1 %v1979_v28 }
  0x71   :  { %1435 = vmatprep.subr.mxu0 %v1858_v0  ;;  %1470 = vmatprep.subr.mxu1 %v1858_v0 }
  0x72   :  { %1436 = vmatpush3.msra.mxu0 %v1984_v31  ;;  %1471 = vmatpush3.msra.mxu1 %v1984_v31 }
  0x73   :  { %1437 = vmatprep.subr.mxu0 %v1858_v0  ;;  %1472 = vmatprep.subr.mxu1 %v1858_v0 }
  0x74   :  { %1438 = vmatpush3.msra.mxu0 %v1987_v33  ;;  %1473 = vmatpush3.msra.mxu1 %v1987_v33 }
  0x75   :  { %1474 = vmatprep.mubr.msk.f32.mxu1 %vm1859_vm0, %v1858_v0  ;;  %1477 = vmatprep.subr.mxu0 %v1858_v0 }
  0x76   :  { %1512 = vmatprep.subr.mxu1 %v1858_v0  ;;  %1363 = vmatprep.mubr.f32.mxu0 %v89_v35 }
  0x77   :  { %1364 = vmatmul.mubr.f32.gmra.mxu0 %v90_v36 }
  0x78   :  { %1366 = vmatprep.mubr.f32.mxu0 %v91_v37  ;;  %v1143_v37 = vld [vmem:[%s2296_s5] ss:$0 sm:$0xff]  ;;  %s1860_s5 = smov [#allocation13]  }
  0x79   :  { %s1127_s22 = sshll.u32 %s1860_s5, 4  ;;  %s1128_s22 = int_to_ptr.vmem [resolvable:$true] %s1127_s22 }
  0x7a   :  { %s1802_s23 = scalar_lea.vmem %s1128_s22, 128  ;;  %p1807_p7 = scmp.lt.s32.totalorder %s1128_s22, %s1128_s22 }
  0x7b   :  { %1367 = vmatmul.mubr.f32.gmra.mxu0 %v92_v38  ;;  %p1803_p6 = scmp.ne.s32.totalorder %s1128_s22, %s1802_s23  ;;  %p1808_p8 = scmp.lt.s32.totalorder %s1802_s23, %s1802_s23 }
  0x7c   :  { %1369 = vmatprep.mubr.f32.mxu0 %v93_v39 }
  0x7d   :  { %p1809_p9 = por %p1808_p8, %p1807_p7 }
  0x7f   :  { %1370 = vmatmul.mubr.f32.gmra.mxu0 %v94_v40  ;;  %p1810_p10 = pnand %p1809_p9, %p1803_p6 }
  0x80   :  { %1439 = vmatprep.mubr.msk.f32.mxu0 %vm1859_vm0, %v1858_v0 }
 0x114   :  { %v1362_v41 = vpop.f32.mrf.mxu0  ;;  %v315_v42 = vpop.f32.mrf.mxu1 }
 0x115   :  { %v190_v55 = vadd.f32 %v1362_v41, %v2066_v43 }
 0x116   :  { %v184_v44 = vpop.f32.mrf.mxu0  ;;  %v1406_v45 = vpop.f32.mrf.mxu1 }
 0x117   :  { %v185_v46 = vadd.f32 %v2066_v43, %v184_v44 }
 0x119   :  { %v319_v47 = vadd.f32 %v315_v42, %v185_v46 }
 0x11b   :  { %1706 = vtanh.f32 %v319_v47 }
 0x128   :  { %v2069_v48 = vpop.eup %1706 }
 0x129   :  { %1440 = vmatmul.mubr.f32.vlgmr.msra.gmra.mxu0 %v2069_v48 }
 0x12a   :  { %1478 = vmatpush3.msra.mxu0 %v1929_v3  ;;  %1509 = vmatprep.mubr.msk.f32.mxu0 %vm1859_vm0, %v1858_v0 }
 0x12b   :  { %1479 = vmatprep.subr.mxu0 %v1858_v0 }
 0x12c   :  { %1480 = vmatpush3.msra.mxu0 %v1932_v4 }
 0x12d   :  { %1481 = vmatprep.subr.mxu0 %v1858_v0 }
 0x12e   :  { %1482 = vmatpush3.msra.mxu0 %v1935_v6 }
 0x12f   :  { %1483 = vmatprep.subr.mxu0 %v1858_v0 }
 0x130   :  { %1484 = vmatpush3.msra.mxu0 %v1939_v8 }
 0x131   :  { %1485 = vmatprep.subr.mxu0 %v1858_v0 }
 0x132   :  { %1486 = vmatpush3.msra.mxu0 %v1943_v10 }
 0x133   :  { %1487 = vmatprep.subr.mxu0 %v1858_v0 }
 0x134   :  { %1488 = vmatpush3.msra.mxu0 %v1947_v12 }
 0x135   :  { %1489 = vmatprep.subr.mxu0 %v1858_v0 }
 0x136   :  { %1490 = vmatpush3.msra.mxu0 %v1951_v14 }
 0x137   :  { %1491 = vmatprep.subr.mxu0 %v1858_v0  ;;  %v2106_v49 = vpop.f32.mrf.mxu0 }
 0x138   :  { %1492 = vmatpush3.msra.mxu0 %v1955_v16  ;;  %v200_v2 = vadd.f32 %v2106_v49, %v2066_v43 }
 0x139   :  { %1493 = vmatprep.subr.mxu0 %v1858_v0  ;;  %v194_v50 = vpop.f32.mrf.mxu0 }
 0x13a   :  { %1494 = vmatpush3.msra.mxu0 %v1959_v18  ;;  %v195_v60 = vadd.f32 %v2066_v43, %v194_v50 }
 0x13b   :  { %1495 = vmatprep.subr.mxu0 %v1858_v0  ;;  %v2108_v51 = vpop.f32.mrf.mxu0 }
 0x13c   :  { %1496 = vmatpush3.msra.mxu0 %v1963_v20 }
 0x13d   :  { %1497 = vmatprep.subr.mxu0 %v1858_v0  ;;  %v2110_v52 = vpop.f32.mrf.mxu0 }
 0x13e   :  { %1498 = vmatpush3.msra.mxu0 %v1967_v22  ;;  %v205_v13 = vadd.f32 %v2066_v43, %v2110_v52 }
 0x13f   :  { %1499 = vmatprep.subr.mxu0 %v1858_v0  ;;  %v2112_v53 = vpop.f32.mrf.mxu0 }
 0x140   :  { %1500 = vmatpush3.msra.mxu0 %v1971_v24 }
 0x141   :  { %1501 = vmatprep.subr.mxu0 %v1858_v0  ;;  %v2114_v54 = vpop.f32.mrf.mxu0 }
 0x142   :  { %1502 = vmatpush3.msra.mxu0 %v1975_v26  ;;  %v215_v32 = vadd.f32 %v2066_v43, %v2114_v54 }
 0x143   :  { %1503 = vmatprep.subr.mxu0 %v1858_v0 }
 0x144   :  { %1504 = vmatpush3.msra.mxu0 %v1979_v28 }
 0x145   :  { %1505 = vmatprep.subr.mxu0 %v1858_v0 }
 0x146   :  { %1506 = vmatpush3.msra.mxu0 %v1984_v31 }
 0x147   :  { %1507 = vmatprep.subr.mxu0 %v1858_v0 }
 0x148   :  { %1508 = vmatpush3.msra.mxu0 %v1987_v33 }
 0x149   :  { %1547 = vmatprep.subr.mxu0 %v1858_v0 }
 0x1e9   :  { %v406_v56 = vpop.f32.mrf.mxu0 }
 0x1ea   :  { %v410_v57 = vadd.f32 %v406_v56, %v190_v55 }
 0x1eb   :  { %v1441_v58 = vpop.f32.mrf.mxu0 }
 0x1ec   :  { %1708 = vtanh.f32 %v410_v57 }
 0x1f9   :  { %v2117_v59 = vpop.eup %1708 }
 0x1fa   :  { %1475 = vmatmul.mubr.f32.vlgmr.msra.gmra.mxu1 %v2117_v59 }
 0x1fb   :  { %1513 = vmatpush3.msra.mxu1 %v1929_v3  ;;  %1544 = vmatprep.mubr.msk.f32.mxu1 %vm1859_vm0, %v1858_v0 }
 0x1fc   :  { %1514 = vmatprep.subr.mxu1 %v1858_v0 }
 0x1fd   :  { %1515 = vmatpush3.msra.mxu1 %v1932_v4 }
 0x1fe   :  { %1516 = vmatprep.subr.mxu1 %v1858_v0 }
 0x1ff   :  { %1517 = vmatpush3.msra.mxu1 %v1935_v6 }
 0x200   :  { %1518 = vmatprep.subr.mxu1 %v1858_v0 }
 0x201   :  { %1519 = vmatpush3.msra.mxu1 %v1939_v8 }
 0x202   :  { %1520 = vmatprep.subr.mxu1 %v1858_v0 }
 0x203   :  { %1521 = vmatpush3.msra.mxu1 %v1943_v10 }
 0x204   :  { %1522 = vmatprep.subr.mxu1 %v1858_v0 }
 0x205   :  { %1523 = vmatpush3.msra.mxu1 %v1947_v12 }
 0x206   :  { %1524 = vmatprep.subr.mxu1 %v1858_v0 }
 0x207   :  { %1525 = vmatpush3.msra.mxu1 %v1951_v14 }
 0x208   :  { %1526 = vmatprep.subr.mxu1 %v1858_v0 }
 0x209   :  { %1527 = vmatpush3.msra.mxu1 %v1955_v16 }
 0x20a   :  { %1528 = vmatprep.subr.mxu1 %v1858_v0 }
 0x20b   :  { %1529 = vmatpush3.msra.mxu1 %v1959_v18 }
 0x20c   :  { %1530 = vmatprep.subr.mxu1 %v1858_v0 }
 0x20d   :  { %1531 = vmatpush3.msra.mxu1 %v1963_v20 }
 0x20e   :  { %1532 = vmatprep.subr.mxu1 %v1858_v0 }
 0x20f   :  { %1533 = vmatpush3.msra.mxu1 %v1967_v22 }
 0x210   :  { %1534 = vmatprep.subr.mxu1 %v1858_v0 }
 0x211   :  { %1535 = vmatpush3.msra.mxu1 %v1971_v24 }
 0x212   :  { %1536 = vmatprep.subr.mxu1 %v1858_v0 }
 0x213   :  { %1537 = vmatpush3.msra.mxu1 %v1975_v26 }
 0x214   :  { %1538 = vmatprep.subr.mxu1 %v1858_v0 }
 0x215   :  { %1539 = vmatpush3.msra.mxu1 %v1979_v28 }
 0x216   :  { %1540 = vmatprep.subr.mxu1 %v1858_v0 }
 0x217   :  { %1541 = vmatpush3.msra.mxu1 %v1984_v31 }
 0x218   :  { %1542 = vmatprep.subr.mxu1 %v1858_v0 }
 0x219   :  { %1543 = vmatpush3.msra.mxu1 %v1987_v33 }
 0x21a   :  { %1582 = vmatprep.subr.mxu1 %v1858_v0 }
 0x2ba   :  { %v497_v61 = vpop.f32.mrf.mxu1 }
 0x2bb   :  { %v501_v62 = vadd.f32 %v497_v61, %v195_v60 }
 0x2bc   :  { %v1476_v63 = vpop.f32.mrf.mxu1 }
 0x2bd   :  { %1710 = vtanh.f32 %v501_v62 }
 0x2ca   :  { %v2155_v1 = vpop.eup %1710 }
 0x2cb   :  { %1510 = vmatmul.mubr.f32.vlgmr.msra.gmra.mxu0 %v2155_v1 }
 0x2cc   :  { %1548 = vmatpush3.msra.mxu0 %v1929_v3  ;;  %1579 = vmatprep.mubr.msk.f32.mxu0 %vm1859_vm0, %v1858_v0 }
 0x2cd   :  { %1549 = vmatprep.subr.mxu0 %v1858_v0 }
 0x2ce   :  { %1550 = vmatpush3.msra.mxu0 %v1932_v4 }
 0x2cf   :  { %1551 = vmatprep.subr.mxu0 %v1858_v0 }
 0x2d0   :  { %1552 = vmatpush3.msra.mxu0 %v1935_v6 }
 0x2d1   :  { %1553 = vmatprep.subr.mxu0 %v1858_v0 }
 0x2d2   :  { %1554 = vmatpush3.msra.mxu0 %v1939_v8 }
 0x2d3   :  { %1555 = vmatprep.subr.mxu0 %v1858_v0 }
 0x2d4   :  { %1556 = vmatpush3.msra.mxu0 %v1943_v10 }
 0x2d5   :  { %1557 = vmatprep.subr.mxu0 %v1858_v0 }
 0x2d6   :  { %1558 = vmatpush3.msra.mxu0 %v1947_v12 }
 0x2d7   :  { %1559 = vmatprep.subr.mxu0 %v1858_v0 }
 0x2d8   :  { %1560 = vmatpush3.msra.mxu0 %v1951_v14 }
 0x2d9   :  { %1561 = vmatprep.subr.mxu0 %v1858_v0 }
 0x2da   :  { %1562 = vmatpush3.msra.mxu0 %v1955_v16 }
 0x2db   :  { %1563 = vmatprep.subr.mxu0 %v1858_v0 }
 0x2dc   :  { %1564 = vmatpush3.msra.mxu0 %v1959_v18 }
 0x2dd   :  { %1565 = vmatprep.subr.mxu0 %v1858_v0 }
 0x2de   :  { %1566 = vmatpush3.msra.mxu0 %v1963_v20 }
 0x2df   :  { %1567 = vmatprep.subr.mxu0 %v1858_v0 }
 0x2e0   :  { %1568 = vmatpush3.msra.mxu0 %v1967_v22 }
 0x2e1   :  { %1569 = vmatprep.subr.mxu0 %v1858_v0 }
 0x2e2   :  { %1570 = vmatpush3.msra.mxu0 %v1971_v24 }
 0x2e3   :  { %1571 = vmatprep.subr.mxu0 %v1858_v0 }
 0x2e4   :  { %1572 = vmatpush3.msra.mxu0 %v1975_v26 }
 0x2e5   :  { %1573 = vmatprep.subr.mxu0 %v1858_v0 }
 0x2e6   :  { %1574 = vmatpush3.msra.mxu0 %v1979_v28 }
 0x2e7   :  { %1575 = vmatprep.subr.mxu0 %v1858_v0 }
 0x2e8   :  { %1576 = vmatpush3.msra.mxu0 %v1984_v31 }
 0x2e9   :  { %1577 = vmatprep.subr.mxu0 %v1858_v0 }
 0x2ea   :  { %1578 = vmatpush3.msra.mxu0 %v1987_v33 }
 0x2eb   :  { %1617 = vmatprep.subr.mxu0 %v1858_v0 }
 0x38b   :  { %v588_v5 = vpop.f32.mrf.mxu0 }
 0x38c   :  { %v592_v7 = vadd.f32 %v588_v5, %v200_v2 }
 0x38d   :  { %v1511_v9 = vpop.f32.mrf.mxu0 }
 0x38e   :  { %1712 = vtanh.f32 %v592_v7 }
 0x39b   :  { %v2194_v11 = vpop.eup %1712 }
 0x39c   :  { %1545 = vmatmul.mubr.f32.vlgmr.msra.gmra.mxu1 %v2194_v11 }
 0x39d   :  { %1583 = vmatpush3.msra.mxu1 %v1929_v3  ;;  %1614 = vmatprep.mubr.msk.f32.mxu1 %vm1859_vm0, %v1858_v0 }
 0x39e   :  { %1584 = vmatprep.subr.mxu1 %v1858_v0 }
 0x39f   :  { %1585 = vmatpush3.msra.mxu1 %v1932_v4 }
 0x3a0   :  { %1586 = vmatprep.subr.mxu1 %v1858_v0 }
 0x3a1   :  { %1587 = vmatpush3.msra.mxu1 %v1935_v6 }
 0x3a2   :  { %1588 = vmatprep.subr.mxu1 %v1858_v0 }
 0x3a3   :  { %1589 = vmatpush3.msra.mxu1 %v1939_v8 }
 0x3a4   :  { %1590 = vmatprep.subr.mxu1 %v1858_v0 }
 0x3a5   :  { %1591 = vmatpush3.msra.mxu1 %v1943_v10 }
 0x3a6   :  { %1592 = vmatprep.subr.mxu1 %v1858_v0 }
 0x3a7   :  { %1593 = vmatpush3.msra.mxu1 %v1947_v12 }
 0x3a8   :  { %1594 = vmatprep.subr.mxu1 %v1858_v0 }
 0x3a9   :  { %1595 = vmatpush3.msra.mxu1 %v1951_v14 }
 0x3aa   :  { %1596 = vmatprep.subr.mxu1 %v1858_v0 }
 0x3ab   :  { %1597 = vmatpush3.msra.mxu1 %v1955_v16 }
 0x3ac   :  { %1598 = vmatprep.subr.mxu1 %v1858_v0 }
 0x3ad   :  { %1599 = vmatpush3.msra.mxu1 %v1959_v18 }
 0x3ae   :  { %1600 = vmatprep.subr.mxu1 %v1858_v0 }
 0x3af   :  { %1601 = vmatpush3.msra.mxu1 %v1963_v20 }
 0x3b0   :  { %1602 = vmatprep.subr.mxu1 %v1858_v0 }
 0x3b1   :  { %1603 = vmatpush3.msra.mxu1 %v1967_v22 }
 0x3b2   :  { %1604 = vmatprep.subr.mxu1 %v1858_v0 }
 0x3b3   :  { %1605 = vmatpush3.msra.mxu1 %v1971_v24 }
 0x3b4   :  { %1606 = vmatprep.subr.mxu1 %v1858_v0 }
 0x3b5   :  { %1607 = vmatpush3.msra.mxu1 %v1975_v26 }
 0x3b6   :  { %1608 = vmatprep.subr.mxu1 %v1858_v0 }
 0x3b7   :  { %1609 = vmatpush3.msra.mxu1 %v1979_v28 }
 0x3b8   :  { %1610 = vmatprep.subr.mxu1 %v1858_v0 }
 0x3b9   :  { %1611 = vmatpush3.msra.mxu1 %v1984_v31 }
 0x3ba   :  { %1612 = vmatprep.subr.mxu1 %v1858_v0 }
 0x3bb   :  { %1613 = vmatpush3.msra.mxu1 %v1987_v33 }
 0x45c   :  { %v679_v15 = vpop.f32.mrf.mxu1 }
 0x45d   :  { %v683_v17 = vadd.f32 %v679_v15, %v205_v13 }
 0x45e   :  { %v1546_v19 = vpop.f32.mrf.mxu1 }
 0x45f   :  { %1714 = vtanh.f32 %v683_v17 }
 0x46c   :  { %v2232_v21 = vpop.eup %1714 }
 0x46d   :  { %1580 = vmatmul.mubr.f32.vlgmr.msra.gmra.mxu0 %v2232_v21 }
 0x46e   :  { %1618 = vmatpush3.msra.mxu0 %v1929_v3  ;;  %1649 = vmatprep.mubr.msk.f32.mxu0 %vm1859_vm0, %v1858_v0  ;;  %v988_v3 = vld [vmem:[#allocation10 + $0x78] sm:$0xff] }
 0x46f   :  { %1619 = vmatprep.subr.mxu0 %v1858_v0  ;;  %1652 = vmatprep.subr.mxu1 %v988_v3 }
 0x470   :  { %1620 = vmatpush3.msra.mxu0 %v1932_v4  ;;  %v210_v4 = vadd.f32 %v2108_v51, %v2066_v43  ;;  %v220_v51 = vadd.f32 %v2112_v53, %v2066_v43 }
 0x471   :  { %1621 = vmatprep.subr.mxu0 %v1858_v0 }
 0x472   :  { %1622 = vmatpush3.msra.mxu0 %v1935_v6 }
 0x473   :  { %1623 = vmatprep.subr.mxu0 %v1858_v0 }
 0x474   :  { %1624 = vmatpush3.msra.mxu0 %v1939_v8 }
 0x475   :  { %1625 = vmatprep.subr.mxu0 %v1858_v0 }
 0x476   :  { %1626 = vmatpush3.msra.mxu0 %v1943_v10 }
 0x477   :  { %1627 = vmatprep.subr.mxu0 %v1858_v0 }
 0x478   :  { %1628 = vmatpush3.msra.mxu0 %v1947_v12 }
 0x479   :  { %1629 = vmatprep.subr.mxu0 %v1858_v0 }
 0x47a   :  { %1630 = vmatpush3.msra.mxu0 %v1951_v14  ;;  %v987_v14 = vld [vmem:[#allocation10 + $0x70] sm:$0xff] }
 0x47b   :  { %1631 = vmatprep.subr.mxu0 %v1858_v0 }
 0x47c   :  { %1632 = vmatpush3.msra.mxu0 %v1955_v16  ;;  %v986_v16 = vld [vmem:[#allocation10 + $0x68] sm:$0xff] }
 0x47d   :  { %1633 = vmatprep.subr.mxu0 %v1858_v0 }
 0x47e   :  { %1634 = vmatpush3.msra.mxu0 %v1959_v18  ;;  %v984_v18 = vld [vmem:[#allocation10 + $0x58] sm:$0xff] }
 0x47f   :  { %1635 = vmatprep.subr.mxu0 %v1858_v0 }
 0x480   :  { %1636 = vmatpush3.msra.mxu0 %v1963_v20  ;;  %v983_v20 = vld [vmem:[#allocation10 + $0x50] sm:$0xff] }
 0x481   :  { %1637 = vmatprep.subr.mxu0 %v1858_v0 }
 0x482   :  { %1638 = vmatpush3.msra.mxu0 %v1967_v22  ;;  %v982_v22 = vld [vmem:[#allocation10 + $0x48] sm:$0xff] }
 0x483   :  { %1639 = vmatprep.subr.mxu0 %v1858_v0 }
 0x484   :  { %1640 = vmatpush3.msra.mxu0 %v1971_v24  ;;  %v980_v24 = vld [vmem:[#allocation10 + $0x38] sm:$0xff] }
 0x485   :  { %1641 = vmatprep.subr.mxu0 %v1858_v0 }
 0x486   :  { %1642 = vmatpush3.msra.mxu0 %v1975_v26  ;;  %v978_v26 = vld [vmem:[#allocation10 + $0x28] sm:$0xff] }
 0x487   :  { %1643 = vmatprep.subr.mxu0 %v1858_v0 }
 0x488   :  { %1644 = vmatpush3.msra.mxu0 %v1979_v28  ;;  %v976_v28 = vld [vmem:[#allocation10 + $0x18] sm:$0xff] }
 0x489   :  { %1645 = vmatprep.subr.mxu0 %v1858_v0 }
 0x48a   :  { %1646 = vmatpush3.msra.mxu0 %v1984_v31  ;;  %v973_v31 = vld [vmem:[#allocation10] sm:$0xff] }
 0x48b   :  { %1647 = vmatprep.subr.mxu0 %v1858_v0  ;;  %v985_v0 = vld [vmem:[#allocation10 + $0x60] sm:$0xff] }
 0x48c   :  { %1648 = vmatpush3.msra.mxu0 %v1987_v33 }
 0x52d   :  { %v770_v6 = vpop.f32.mrf.mxu0 }
 0x52e   :  { %v774_v8 = vadd.f32 %v770_v6, %v210_v4 }
 0x52f   :  { %v1581_v10 = vpop.f32.mrf.mxu0 }
 0x530   :  { %1716 = vtanh.f32 %v774_v8 }
 0x53d   :  { %v1717_v12 = vpop.eup %1716 }
 0x53e   :  { %1615 = vmatmul.mubr.f32.vlgmr.msra.gmra.mxu1 %v1717_v12 }
 0x53f   :  { %1653 = vmatpush3.msra.mxu1 %v988_v3  ;;  %1684 = vmatprep.mubr.f32.mxu1 %v2069_v48 }
 0x540   :  { %1654 = vmatprep.subr.mxu1 %v987_v14 }
 0x541   :  { %1655 = vmatpush3.msra.mxu1 %v987_v14 }
 0x542   :  { %1656 = vmatprep.subr.mxu1 %v986_v16 }
 0x543   :  { %1657 = vmatpush3.msra.mxu1 %v986_v16 }
 0x544   :  { %1658 = vmatprep.subr.mxu1 %v985_v0 }
 0x545   :  { %1659 = vmatpush3.msra.mxu1 %v985_v0 }
 0x546   :  { %1660 = vmatprep.subr.mxu1 %v984_v18 }
 0x547   :  { %1661 = vmatpush3.msra.mxu1 %v984_v18 }
 0x548   :  { %1662 = vmatprep.subr.mxu1 %v983_v20 }
 0x549   :  { %1663 = vmatpush3.msra.mxu1 %v983_v20 }
 0x54a   :  { %1664 = vmatprep.subr.mxu1 %v982_v22 }
 0x54b   :  { %1665 = vmatpush3.msra.mxu1 %v982_v22 }
 0x54c   :  { %1666 = vmatprep.subr.mxu1 %v981_v23 }
 0x54d   :  { %1667 = vmatpush3.msra.mxu1 %v981_v23 }
 0x54e   :  { %1668 = vmatprep.subr.mxu1 %v980_v24 }
 0x54f   :  { %1669 = vmatpush3.msra.mxu1 %v980_v24 }
 0x550   :  { %1670 = vmatprep.subr.mxu1 %v979_v25 }
 0x551   :  { %1671 = vmatpush3.msra.mxu1 %v979_v25 }
 0x552   :  { %1672 = vmatprep.subr.mxu1 %v978_v26 }
 0x553   :  { %1673 = vmatpush3.msra.mxu1 %v978_v26 }
 0x554   :  { %1674 = vmatprep.subr.mxu1 %v977_v27 }
 0x555   :  { %1675 = vmatpush3.msra.mxu1 %v977_v27 }
 0x556   :  { %1676 = vmatprep.subr.mxu1 %v976_v28 }
 0x557   :  { %1677 = vmatpush3.msra.mxu1 %v976_v28 }
 0x558   :  { %1678 = vmatprep.subr.mxu1 %v975_v29 }
 0x559   :  { %1679 = vmatpush3.msra.mxu1 %v975_v29 }
 0x55a   :  { %1680 = vmatprep.subr.mxu1 %v974_v30 }
 0x55b   :  { %1681 = vmatpush3.msra.mxu1 %v974_v30 }
 0x55c   :  { %1682 = vmatprep.subr.mxu1 %v973_v31 }
 0x55d   :  { %1683 = vmatpush3.msra.mxu1 %v973_v31 }
 0x55e   :  { %1685 = vmatmul.mubr.f32.vlgmr.msra.gmra.mxu1 %v2117_v59 }
 0x55f   :  { %1687 = vmatprep.mubr.f32.mxu1 %v2155_v1 }
 0x562   :  { %1688 = vmatmul.mubr.f32.gmra.mxu1 %v2194_v11 }
 0x563   :  { %1690 = vmatprep.mubr.f32.mxu1 %v2232_v21 }
 0x566   :  { %1691 = vmatmul.mubr.f32.gmra.mxu1 %v1717_v12 }
 0x5fe   :  { %v861_v33 = vpop.f32.mrf.mxu1 }
 0x5ff   :  { %v865_v34 = vadd.f32 %v861_v33, %v215_v32 }
 0x600   :  { %v1616_v35 = vpop.f32.mrf.mxu1 }
 0x601   :  { %1718 = vtanh.f32 %v865_v34 }
 0x60e   :  { %v1719_v36 = vpop.eup %1718 }
 0x60f   :  { %1650 = vmatmul.mubr.f32.vlgmr.msra.gmra.mxu0 %v1719_v36  ;;  %1693 = vmatprep.mubr.f32.mxu1 %v1719_v36 }
 0x61e   :  { %v1686_v38 = vpop.f32.mrf.mxu1 }
 0x61f   :  { %v1068_v39 = vadd.f32 %v1686_v38, %v1143_v37 }
 0x620   :  { %v1062_v40 = vpop.f32.mrf.mxu1 }
 0x621   :  { %1102 = vst [vmem:[#allocation12 + $0x8] sm:$0xff] %v1068_v39  ;;  %v1063_v41 = vadd.f32 %v1143_v37, %v1062_v40 }
 0x622   :  { %v1689_v42 = vpop.f32.mrf.mxu1 }
 0x623   :  { %1101 = vst [vmem:[#allocation12] sm:$0xff] %v1063_v41  ;;  %v1078_v44 = vadd.f32 %v1689_v42, %v1143_v37 }
 0x624   :  { %v1072_v45 = vpop.f32.mrf.mxu1 }
 0x625   :  { %1104 = vst [vmem:[#allocation12 + $0x18] sm:$0xff] %v1078_v44  ;;  %v1073_v46 = vadd.f32 %v1143_v37, %v1072_v45 }
 0x626   :  { %v1692_v47 = vpop.f32.mrf.mxu1 }
 0x627   :  { %1103 = vst [vmem:[#allocation12 + $0x10] sm:$0xff] %v1073_v46  ;;  %v1088_v48 = vadd.f32 %v1692_v47, %v1143_v37 }
 0x628   :  { %v1082_v49 = vpop.f32.mrf.mxu1 }
 0x629   :  { %1106 = vst [vmem:[#allocation12 + $0x28] sm:$0xff] %v1088_v48  ;;  %v1083_v50 = vadd.f32 %v1143_v37, %v1082_v49 }
 0x62b   :  { %1105 = vst [vmem:[#allocation12 + $0x20] sm:$0xff] %v1083_v50 }
 0x6cf   :  { %v952_v52 = vpop.f32.mrf.mxu0 }
 0x6d0   :  { %v956_v54 = vadd.f32 %v952_v52, %v220_v51 }
 0x6d1   :  { %v1651_v55 = vpop.f32.mrf.mxu0 }
 0x6d2   :  { %1720 = vtanh.f32 %v956_v54 }
 0x6df   :  { %v1721_v56 = vpop.eup %1720 }
 0x6e0   :  { %964 = vst [vmem:[#allocation13] sm:$0xff] %v1721_v56  ;;  %1694 = vmatmul.mubr.f32.gmra.mxu1 %v1721_v56 }
 0x6e1   :  { %1813 = shalt.err (!%p1810_p10)
}
 0x6e2   :  { %1130 = dma.vmem_to_hbm [thread:$0]  %s1128_s22, 128, %s2298_s7, [#allocation14]  }
 0x6e3   :  { %s1861_s26 = smov [#allocation12]  }
 0x6e4   :  { %s1114_s27 = sshll.u32 %s1861_s26, 4  ;;  %s1115_s27 = int_to_ptr.vmem [resolvable:$true] %s1114_s27 }
 0x6e5   :  { %s1822_s28 = scalar_lea.vmem %s1115_s27, 1024  ;;  %p1827_p12 = scmp.lt.s32.totalorder %s1115_s27, %s1115_s27 }
 0x6e6   :  { %p1823_p11 = scmp.ne.s32.totalorder %s1115_s27, %s1822_s28  ;;  %p1828_p13 = scmp.lt.s32.totalorder %s1822_s28, %s1822_s28 }
 0x6e8   :  { %p1829_p0 = por %p1828_p13, %p1827_p12 }
 0x6ea   :  { %p1830_p1 = pnand %p1829_p0, %p1823_p11 }
 0x7a0   :  { %v1695_v43 = vpop.f32.mrf.mxu1 }
 0x7a1   :  { %v1098_v53 = vadd.f32 %v1695_v43, %v1143_v37 }
 0x7a2   :  { %v1092_v57 = vpop.f32.mrf.mxu1 }
 0x7a3   :  { %1108 = vst [vmem:[#allocation12 + $0x38] sm:$0xff] %v1098_v53  ;;  %v1093_v58 = vadd.f32 %v1143_v37, %v1092_v57 }
 0x7a5   :  { %1107 = vst [vmem:[#allocation12 + $0x30] sm:$0xff] %v1093_v58 }
 0x7a6   :  { %1833 = shalt.err (!%p1830_p1)
}
 0x7a7   :  { %1120 = dma.vmem_to_hbm [thread:$0]  %s1115_s27, 1024, %s2297_s6, [#allocation6], %s1854_s29, %s1854_s29, %s1855_s30  }
 0x7a8   :  { %1848 = dma.done.wait [#allocation6], 1024  }
 0x7a9   :  { %1849 = vsyncadd [#allocation6], 4294966272 }
 0x7aa   :  { %1850 = dma.done.wait [#allocation14], 128  }
 0x7ab   :  { %1851 = vsyncadd [#allocation14], 4294967168 }
 0x7ac   :  { %1137 = vsyncpa [#allocation5], 1 }
 0x7ad   :  { %1138 = vsyncpa [#allocation8], 1 }
 0x7ae   :  { %1139 = vsyncpa [#allocation11], 1 }
 0x7af   :  { %1140 = vsyncpa [#allocation6], 1 }
 0x7b0   :  { %1141 = vsyncpa [#allocation14], 1 }

</bundles_post_ra>
